<compile_context>
chip_gen: v7x
topology: tpu7x:2x2x1
jax: 0.10.0
libtpu: 0.0.40
codegen_flags: <defaults>
</compile_context>

<pallas_src>
import math
from functools import partial

import jax
import jax.numpy as jnp
from jax.experimental import pallas as pl
from jax.experimental.pallas import tpu as pltpu


# ------------------------------ helpers --------------------------------------
def _round_up(x, m):
    return (x + m - 1) // m * m


def _choose_row_block(n, target=256):
    """Sublane-aligned (multiple of 8) row block; prefer >=2 blocks so both v7x TCs get work."""
    if n <= 8:
        return n
    tm = min(target, (n // 8) * 8)
    if (n + tm - 1) // tm < 2:
        tm = max(8, _round_up((n + 1) // 2, 8))
    return tm


def _pad_rows(x2, n, tm):
    n_pad = pl.cdiv(n, tm) * tm
    if n_pad != n:
        x2 = jnp.pad(x2, ((0, n_pad - n), (0, 0)))   # zero rows -> LN/matmul stay finite
    return x2, n_pad


# -------------------- Kernel 1: LN1 + fused QKV projection -------------------
def _ln_qkv_kernel(x_ref, a_ref, b_ref, wqkv_ref, bqkv_ref, q_ref, k_ref, v_ref, *, eps):
    x = x_ref[...].astype(jnp.float32)                       # [tm, D]
    d = x.shape[-1]
    mean = jnp.mean(x, axis=-1, keepdims=True)
    xc = x - mean
    # torch x.std(-1): unbiased (N-1) std; eps added to std (not var)
    std = jnp.sqrt(jnp.sum(xc * xc, axis=-1, keepdims=True) / (d - 1))
    xn = a_ref[...] * xc / (std + eps) + b_ref[...]          # [tm, D]
    xn = xn.astype(x_ref.dtype)
    qkv = jnp.dot(xn, wqkv_ref[...], preferred_element_type=jnp.float32) + bqkv_ref[...]
    qkv = qkv.astype(q_ref.dtype)                            # [tm, 3D]
    q_ref[...] = qkv[:, 0 * d:1 * d]
    k_ref[...] = qkv[:, 1 * d:2 * d]
    v_ref[...] = qkv[:, 2 * d:3 * d]


def fused_ln_qkv(x, ln_a, ln_b, wqkv, bqkv, eps=1e-6, row_block=256):
    B, S, D = x.shape
    N = B * S
    tm = _choose_row_block(N, row_block)
    x2, n_pad = _pad_rows(x.reshape(N, D), N, tm)
    q, k, v = pl.pallas_call(
        partial(_ln_qkv_kernel, eps=eps),
        out_shape=(jax.ShapeDtypeStruct((n_pad, D), x.dtype),) * 3,
        grid=(n_pad // tm,),
        in_specs=[
            pl.BlockSpec((tm, D), lambda i: (i, 0)),
            pl.BlockSpec((1, D), lambda i: (0, 0)),
            pl.BlockSpec((1, D), lambda i: (0, 0)),
            pl.BlockSpec((D, 3 * D), lambda i: (0, 0)),      # weights stay VMEM-resident
            pl.BlockSpec((1, 3 * D), lambda i: (0, 0)),
        ],
        out_specs=(pl.BlockSpec((tm, D), lambda i: (i, 0)),) * 3,
        compiler_params=pltpu.CompilerParams(dimension_semantics=("parallel",)),
    )(x2, ln_a.reshape(1, D), ln_b.reshape(1, D), wqkv, bqkv.reshape(1, 3 * D))
    q = q[:N].reshape(B, S, D)
    k = k[:N].reshape(B, S, D)
    v = v[:N].reshape(B, S, D)
    return q, k, v


# ------- Kernel 2: multi-head attention + output projection + residual -------
def _attn_kernel(q_ref, k_ref, v_ref, xr_ref, m_ref, m1_ref, m2_ref, wo_ref, bo_ref,
                 o_ref, att_ref, *, num_heads, scale):
    q = q_ref[0].astype(jnp.float32) * scale                 # scale folded into q ([S,D] mul)
    k = k_ref[0].astype(jnp.float32)
    v = v_ref[0].astype(jnp.float32)
    # combine the three masks in-kernel (no extra [B,S,S] HBM materialization)
    m = (m_ref[0].astype(jnp.float32) * m1_ref[0].astype(jnp.float32)
         * m2_ref[0].astype(jnp.float32))                    # [S, S]
    S, D = q.shape
    dk = D // num_heads

    ctx_parts = []
    for h in range(num_heads):                               # static unroll: heads split in-kernel
        lo = h * dk
        qh = q[:, lo:lo + dk]                                # [S, dk]
        kh = k[:, lo:lo + dk]
        vh = v[:, lo:lo + dk]
        s = jnp.dot(qh, kh.T, preferred_element_type=jnp.float32)   # [S, S]
        s = jnp.where(m == 0.0, jnp.float32(-1e9), s)        # masked_fill
        s = s - jnp.max(s, axis=-1, keepdims=True)           # stable softmax
        e = jnp.exp(s)
        p = e * pl.reciprocal(jnp.sum(e, axis=-1, keepdims=True), approx=True)
        att_ref[0, h] = p.astype(att_ref.dtype)
        ctx_parts.append(jnp.dot(p, vh, preferred_element_type=jnp.float32))

    ctx = jnp.concatenate(ctx_parts, axis=-1)                # [S, D] — heads repacked on lane dim
    proj = jnp.dot(ctx.astype(wo_ref.dtype), wo_ref[...],
                   preferred_element_type=jnp.float32) + bo_ref[...]
    o_ref[0] = (xr_ref[0].astype(jnp.float32) + proj).astype(o_ref.dtype)


def fused_attention(q, k, v, x_resid, mask, mask1, mask2, wo, bo, num_heads):
    B, S, D = q.shape
    dk = D // num_heads
    scale = 1.0 / math.sqrt(dk)
    out, att = pl.pallas_call(
        partial(_attn_kernel, num_heads=num_heads, scale=scale),
        out_shape=(
            jax.ShapeDtypeStruct((B, S, D), x_resid.dtype),
            jax.ShapeDtypeStruct((B, num_heads, S, S), x_resid.dtype),
        ),
        grid=(B,),
        in_specs=[
            pl.BlockSpec((1, S, D), lambda b: (b, 0, 0)),    # q
            pl.BlockSpec((1, S, D), lambda b: (b, 0, 0)),    # k
            pl.BlockSpec((1, S, D), lambda b: (b, 0, 0)),    # v
            pl.BlockSpec((1, S, D), lambda b: (b, 0, 0)),    # residual x
            pl.BlockSpec((1, S, S), lambda b: (b, 0, 0)),    # mask
            pl.BlockSpec((1, S, S), lambda b: (b, 0, 0)),    # mask1
            pl.BlockSpec((1, S, S), lambda b: (b, 0, 0)),    # mask2
            pl.BlockSpec((D, D), lambda b: (0, 0)),          # wo (resident)
            pl.BlockSpec((1, D), lambda b: (0, 0)),          # bo
        ],
        out_specs=(
            pl.BlockSpec((1, S, D), lambda b: (b, 0, 0)),
            pl.BlockSpec((1, num_heads, S, S), lambda b: (b, 0, 0, 0)),
        ),
        compiler_params=pltpu.CompilerParams(dimension_semantics=("parallel",)),
    )(q, k, v, x_resid, mask, mask1, mask2, wo, bo.reshape(1, D))
    return out, att


# -------------- Kernel 3: LN2 + FFN (matmul-ReLU-matmul) + residual ----------
def _ln_ffn_kernel(x_ref, a_ref, b_ref, w1_ref, b1_ref, w2_ref, b2_ref, o_ref, *, eps):
    x = x_ref[...].astype(jnp.float32)                       # [tm, D]
    d = x.shape[-1]
    mean = jnp.mean(x, axis=-1, keepdims=True)
    xc = x - mean
    std = jnp.sqrt(jnp.sum(xc * xc, axis=-1, keepdims=True) / (d - 1))
    xn = (a_ref[...] * xc / (std + eps) + b_ref[...]).astype(x_ref.dtype)
    h = jnp.dot(xn, w1_ref[...], preferred_element_type=jnp.float32) + b1_ref[...]
    h = jnp.maximum(h, 0.0).astype(x_ref.dtype)
    y = jnp.dot(h, w2_ref[...], preferred_element_type=jnp.float32) + b2_ref[...]
    o_ref[...] = (x + y).astype(o_ref.dtype)                 # fused residual add


def fused_ln_ffn(x, ln_a, ln_b, w1, b1, w2, b2, eps=1e-6, row_block=256):
    B, S, D = x.shape
    Dff = w1.shape[1]
    N = B * S
    tm = _choose_row_block(N, row_block)
    x2, n_pad = _pad_rows(x.reshape(N, D), N, tm)
    out = pl.pallas_call(
        partial(_ln_ffn_kernel, eps=eps),
        out_shape=jax.ShapeDtypeStruct((n_pad, D), x.dtype),
        grid=(n_pad // tm,),
        in_specs=[
            pl.BlockSpec((tm, D), lambda i: (i, 0)),
            pl.BlockSpec((1, D), lambda i: (0, 0)),
            pl.BlockSpec((1, D), lambda i: (0, 0)),
            pl.BlockSpec((D, Dff), lambda i: (0, 0)),        # resident weights
            pl.BlockSpec((1, Dff), lambda i: (0, 0)),
            pl.BlockSpec((Dff, D), lambda i: (0, 0)),
            pl.BlockSpec((1, D), lambda i: (0, 0)),
        ],
        out_specs=pl.BlockSpec((tm, D), lambda i: (i, 0)),
        compiler_params=pltpu.CompilerParams(dimension_semantics=("parallel",)),
    )(x2, ln_a.reshape(1, D), ln_b.reshape(1, D), w1, b1.reshape(1, Dff), w2, b2.reshape(1, D))
    return out[:N].reshape(B, S, D)


# ----------------------------- full encoder layer ----------------------------
def encoder_layer_forward(x, mask, mask1, mask2, p, num_heads):
    # fused QKV weight: one [D, 3D] matmul in kernel 1
    wqkv = jnp.concatenate([p["wq"], p["wk"], p["wv"]], axis=1)
    bqkv = jnp.concatenate([p["bq"], p["bk"], p["bv"]], axis=0)

    # SublayerConnection (attention branch); dropout = identity in eval mode
    q, k, v = fused_ln_qkv(x, p["ln1_a"], p["ln1_b"], wqkv, bqkv)
    x1, att = fused_attention(q, k, v, x, mask, mask1, mask2, p["wo"], p["bo"], num_heads)

    # SublayerConnection1 (feed-forward branch)
    ret = fused_ln_ffn(x1, p["ln2_a"], p["ln2_b"],
                       p["w_ff1"], p["b_ff1"], p["w_ff2"], p["b_ff2"])
    return ret, att


# ------------------------------ parameter init -------------------------------
def _xavier(key, shape):
    fan_in, fan_out = shape
    limit = math.sqrt(6.0 / (fan_in + fan_out))
    return jax.random.uniform(key, shape, jnp.float32, -limit, limit)


def init_params(key, D, D_ff):
    ks = jax.random.split(key, 6)
    return {
        "ln1_a": jnp.ones((D,), jnp.float32),
        "ln1_b": jnp.zeros((D,), jnp.float32),
        "ln2_a": jnp.ones((D,), jnp.float32),
        "ln2_b": jnp.zeros((D,), jnp.float32),
        "wq": _xavier(ks[0], (D, D)), "bq": jnp.zeros((D,), jnp.float32),
        "wk": _xavier(ks[1], (D, D)), "bk": jnp.zeros((D,), jnp.float32),
        "wv": _xavier(ks[2], (D, D)), "bv": jnp.zeros((D,), jnp.float32),
        "wo": _xavier(ks[3], (D, D)), "bo": jnp.zeros((D,), jnp.float32),
        "w_ff1": _xavier(ks[4], (D, D_ff)), "b_ff1": jnp.zeros((D_ff,), jnp.float32),
        "w_ff2": _xavier(ks[5], (D_ff, D)), "b_ff2": jnp.zeros((D,), jnp.float32),
    }


# ---------------------------------- main -------------------------------------
if __name__ == "__main__":
    B, S, D, H, D_ff = 2, 8, 32, 4, 64

    key = jax.random.PRNGKey(0)
    k_x, k_p = jax.random.split(key)
    x = jax.random.normal(k_x, (B, S, D), jnp.float32)

    # padding-style mask: batch 0 uses all 8 tokens, batch 1 uses first 6
    lengths = jnp.array([8, 6], jnp.int32)
    col = jnp.arange(S)[None, None, :]                       # [1, 1, S]
    mask = (col < lengths[:, None, None]).astype(jnp.float32)
    mask = jnp.broadcast_to(mask, (B, S, S))
    mask1 = jnp.ones((B, S, S), jnp.float32)
    mask2 = jnp.ones((B, S, S), jnp.float32)

    params = init_params(k_p, D, D_ff)

    fwd = jax.jit(encoder_layer_forward, static_argnums=(5,))
    ret, att = fwd(x, mask, mask1, mask2, params, H)
    ret = jax.block_until_ready(ret)
    att = jax.block_until_ready(att)

    assert ret.shape == (B, S, D) and att.shape == (B, H, S, S)
    assert bool(jnp.all(jnp.isfinite(ret))) and bool(jnp.all(jnp.isfinite(att)))
    print("KERNEL_OK")
</pallas_src>

<mosaic_0001>
module attributes {stable_mosaic.version = 11 : i64} {
  func.func @_attn_kernel(%arg0: i32, %arg1: memref<1x8x32xf32, #tpu.memory_space<vmem>>, %arg2: memref<1x8x32xf32, #tpu.memory_space<vmem>>, %arg3: memref<1x8x32xf32, #tpu.memory_space<vmem>>, %arg4: memref<1x8x32xf32, #tpu.memory_space<vmem>>, %arg5: memref<1x8x8xf32, #tpu.memory_space<vmem>>, %arg6: memref<1x8x8xf32, #tpu.memory_space<vmem>>, %arg7: memref<1x8x8xf32, #tpu.memory_space<vmem>>, %arg8: memref<32x32xf32, #tpu.memory_space<vmem>>, %arg9: memref<1x32xf32, #tpu.memory_space<vmem>>, %arg10: memref<1x8x32xf32, #tpu.memory_space<vmem>>, %arg11: memref<1x4x8x8xf32, #tpu.memory_space<vmem>>) attributes {dimension_semantics = [#tpu.dimension_semantics<parallel>], iteration_bounds = array<i64: 2>, scalar_prefetch = 0 : i64, scratch_operands = 0 : i64, tpu.core_type = #tpu.core_type<tc>, window_params = [{transform_indices = @transform_0, window_bounds = array<i64: 1, 8, 32>}, {transform_indices = @transform_1, window_bounds = array<i64: 1, 8, 32>}, {transform_indices = @transform_2, window_bounds = array<i64: 1, 8, 32>}, {transform_indices = @transform_3, window_bounds = array<i64: 1, 8, 32>}, {transform_indices = @transform_4, window_bounds = array<i64: 1, 8, 8>}, {transform_indices = @transform_5, window_bounds = array<i64: 1, 8, 8>}, {transform_indices = @transform_6, window_bounds = array<i64: 1, 8, 8>}, {pipeline_mode = #tpu.pipeline_mode<synchronous>, transform_indices = @transform_7, window_bounds = array<i64: 32, 32>}, {pipeline_mode = #tpu.pipeline_mode<synchronous>, transform_indices = @transform_8, window_bounds = array<i64: 1, 32>}, {transform_indices = @transform_9, window_bounds = array<i64: 1, 8, 32>}, {transform_indices = @transform_10, window_bounds = array<i64: 1, 4, 8, 8>}]} {
    %c0 = arith.constant 0 : index
    %c0_0 = arith.constant 0 : index
    %c0_1 = arith.constant 0 : index
    %0 = vector.load %arg1[%c0, %c0_0, %c0_1] : memref<1x8x32xf32, #tpu.memory_space<vmem>>, vector<1x8x32xf32>
    %1 = vector.shape_cast %0 : vector<1x8x32xf32> to vector<8x32xf32>
    %cst = arith.constant 0.353553385 : f32
    %2 = vector.broadcast %cst : f32 to vector<8x32xf32>
    %3 = arith.mulf %1, %2 : vector<8x32xf32>
    %c0_2 = arith.constant 0 : index
    %c0_3 = arith.constant 0 : index
    %c0_4 = arith.constant 0 : index
    %4 = vector.load %arg2[%c0_2, %c0_3, %c0_4] : memref<1x8x32xf32, #tpu.memory_space<vmem>>, vector<1x8x32xf32>
    %5 = vector.shape_cast %4 : vector<1x8x32xf32> to vector<8x32xf32>
    %c0_5 = arith.constant 0 : index
    %c0_6 = arith.constant 0 : index
    %c0_7 = arith.constant 0 : index
    %6 = vector.load %arg3[%c0_5, %c0_6, %c0_7] : memref<1x8x32xf32, #tpu.memory_space<vmem>>, vector<1x8x32xf32>
    %7 = vector.shape_cast %6 : vector<1x8x32xf32> to vector<8x32xf32>
    %c0_8 = arith.constant 0 : index
    %c0_9 = arith.constant 0 : index
    %c0_10 = arith.constant 0 : index
    %8 = vector.load %arg5[%c0_8, %c0_9, %c0_10] : memref<1x8x8xf32, #tpu.memory_space<vmem>>, vector<1x8x8xf32>
    %9 = vector.shape_cast %8 : vector<1x8x8xf32> to vector<8x8xf32>
    %c0_11 = arith.constant 0 : index
    %c0_12 = arith.constant 0 : index
    %c0_13 = arith.constant 0 : index
    %10 = vector.load %arg6[%c0_11, %c0_12, %c0_13] : memref<1x8x8xf32, #tpu.memory_space<vmem>>, vector<1x8x8xf32>
    %11 = vector.shape_cast %10 : vector<1x8x8xf32> to vector<8x8xf32>
    %12 = arith.mulf %9, %11 : vector<8x8xf32>
    %c0_14 = arith.constant 0 : index
    %c0_15 = arith.constant 0 : index
    %c0_16 = arith.constant 0 : index
    %13 = vector.load %arg7[%c0_14, %c0_15, %c0_16] : memref<1x8x8xf32, #tpu.memory_space<vmem>>, vector<1x8x8xf32>
    %14 = vector.shape_cast %13 : vector<1x8x8xf32> to vector<8x8xf32>
    %15 = arith.mulf %12, %14 : vector<8x8xf32>
    %16 = vector.extract_strided_slice %3 {offsets = [0, 0], sizes = [8, 8], strides = [1, 1]} : vector<8x32xf32> to vector<8x8xf32>
    %17 = vector.extract_strided_slice %5 {offsets = [0, 0], sizes = [8, 8], strides = [1, 1]} : vector<8x32xf32> to vector<8x8xf32>
    %18 = vector.extract_strided_slice %7 {offsets = [0, 0], sizes = [8, 8], strides = [1, 1]} : vector<8x32xf32> to vector<8x8xf32>
    %19 = tpu.transpose %17, [1, 0] : vector<8x8xf32> -> vector<8x8xf32>
    %cst_17 = arith.constant dense<0.000000e+00> : vector<8x8xf32>
    %20 = tpu.matmul %16, %19, %cst_17 {dimension_numbers = #tpu.dot_dimension_numbers<[1], [0], [0], [1], [0, 0, 1, 1], [], []>} : vector<8x8xf32>, vector<8x8xf32>, vector<8x8xf32> -> vector<8x8xf32>
    %cst_18 = arith.constant 0.000000e+00 : f32
    %21 = vector.broadcast %cst_18 : f32 to vector<8x8xf32>
    %22 = arith.cmpf oeq, %15, %21 : vector<8x8xf32>
    %cst_19 = arith.constant -1.000000e+09 : f32
    %23 = vector.broadcast %cst_19 : f32 to vector<8x8xf32>
    %24 = arith.select %22, %23, %20 : vector<8x8xi1>, vector<8x8xf32>
    %cst_20 = arith.constant dense<0xFF800000> : vector<8xf32>
    %25 = vector.multi_reduction <maximumf>, %24, %cst_20 [1] : vector<8x8xf32> to vector<8xf32>
    %26 = vector.shape_cast %25 : vector<8xf32> to vector<8x1xf32>
    %27 = vector.broadcast %26 : vector<8x1xf32> to vector<8x8xf32>
    %28 = arith.subf %24, %27 : vector<8x8xf32>
    %29 = math.exp %28 : vector<8x8xf32>
    %cst_21 = arith.constant dense<0.000000e+00> : vector<8xf32>
    %30 = vector.multi_reduction <add>, %29, %cst_21 [1] : vector<8x8xf32> to vector<8xf32>
    %31 = vector.shape_cast %30 : vector<8xf32> to vector<8x1xf32>
    %32 = tpu.reciprocal %31 {approx = true} : vector<8x1xf32> -> vector<8x1xf32>
    %33 = vector.broadcast %32 : vector<8x1xf32> to vector<8x8xf32>
    %34 = arith.mulf %29, %33 : vector<8x8xf32>
    %c0_22 = arith.constant 0 : index
    %c0_23 = arith.constant 0 : index
    %c0_24 = arith.constant 0 : index
    %c0_25 = arith.constant 0 : index
    %35 = vector.load %arg11[%c0_22, %c0_23, %c0_24, %c0_25] : memref<1x4x8x8xf32, #tpu.memory_space<vmem>>, vector<1x1x8x8xf32>
    %36 = vector.shape_cast %35 : vector<1x1x8x8xf32> to vector<8x8xf32>
    %37 = vector.shape_cast %34 : vector<8x8xf32> to vector<1x1x8x8xf32>
    tpu.vector_store %arg11[%c0_22, %c0_23, %c0_24, %c0_25], %37 {strides = array<i32>} : memref<1x4x8x8xf32, #tpu.memory_space<vmem>>, vector<1x1x8x8xf32>,
    %cst_26 = arith.constant dense<0.000000e+00> : vector<8x8xf32>
    %38 = tpu.matmul %34, %18, %cst_26 {dimension_numbers = #tpu.dot_dimension_numbers<[1], [0], [0], [1], [0, 0, 1, 1], [], []>} : vector<8x8xf32>, vector<8x8xf32>, vector<8x8xf32> -> vector<8x8xf32>
    %39 = vector.extract_strided_slice %3 {offsets = [0, 8], sizes = [8, 8], strides = [1, 1]} : vector<8x32xf32> to vector<8x8xf32>
    %40 = vector.extract_strided_slice %5 {offsets = [0, 8], sizes = [8, 8], strides = [1, 1]} : vector<8x32xf32> to vector<8x8xf32>
    %41 = vector.extract_strided_slice %7 {offsets = [0, 8], sizes = [8, 8], strides = [1, 1]} : vector<8x32xf32> to vector<8x8xf32>
    %42 = tpu.transpose %40, [1, 0] : vector<8x8xf32> -> vector<8x8xf32>
    %cst_27 = arith.constant dense<0.000000e+00> : vector<8x8xf32>
    %43 = tpu.matmul %39, %42, %cst_27 {dimension_numbers = #tpu.dot_dimension_numbers<[1], [0], [0], [1], [0, 0, 1, 1], [], []>} : vector<8x8xf32>, vector<8x8xf32>, vector<8x8xf32> -> vector<8x8xf32>
    %cst_28 = arith.constant 0.000000e+00 : f32
    %44 = vector.broadcast %cst_28 : f32 to vector<8x8xf32>
    %45 = arith.cmpf oeq, %15, %44 : vector<8x8xf32>
    %cst_29 = arith.constant -1.000000e+09 : f32
    %46 = vector.broadcast %cst_29 : f32 to vector<8x8xf32>
    %47 = arith.select %45, %46, %43 : vector<8x8xi1>, vector<8x8xf32>
    %cst_30 = arith.constant dense<0xFF800000> : vector<8xf32>
    %48 = vector.multi_reduction <maximumf>, %47, %cst_30 [1] : vector<8x8xf32> to vector<8xf32>
    %49 = vector.shape_cast %48 : vector<8xf32> to vector<8x1xf32>
    %50 = vector.broadcast %49 : vector<8x1xf32> to vector<8x8xf32>
    %51 = arith.subf %47, %50 : vector<8x8xf32>
    %52 = math.exp %51 : vector<8x8xf32>
    %cst_31 = arith.constant dense<0.000000e+00> : vector<8xf32>
    %53 = vector.multi_reduction <add>, %52, %cst_31 [1] : vector<8x8xf32> to vector<8xf32>
    %54 = vector.shape_cast %53 : vector<8xf32> to vector<8x1xf32>
    %55 = tpu.reciprocal %54 {approx = true} : vector<8x1xf32> -> vector<8x1xf32>
    %56 = vector.broadcast %55 : vector<8x1xf32> to vector<8x8xf32>
    %57 = arith.mulf %52, %56 : vector<8x8xf32>
    %c0_32 = arith.constant 0 : index
    %c1 = arith.constant 1 : index
    %c0_33 = arith.constant 0 : index
    %c0_34 = arith.constant 0 : index
    %58 = vector.load %arg11[%c0_32, %c1, %c0_33, %c0_34] : memref<1x4x8x8xf32, #tpu.memory_space<vmem>>, vector<1x1x8x8xf32>
    %59 = vector.shape_cast %58 : vector<1x1x8x8xf32> to vector<8x8xf32>
    %60 = vector.shape_cast %57 : vector<8x8xf32> to vector<1x1x8x8xf32>
    tpu.vector_store %arg11[%c0_32, %c1, %c0_33, %c0_34], %60 {strides = array<i32>} : memref<1x4x8x8xf32, #tpu.memory_space<vmem>>, vector<1x1x8x8xf32>,
    %cst_35 = arith.constant dense<0.000000e+00> : vector<8x8xf32>
    %61 = tpu.matmul %57, %41, %cst_35 {dimension_numbers = #tpu.dot_dimension_numbers<[1], [0], [0], [1], [0, 0, 1, 1], [], []>} : vector<8x8xf32>, vector<8x8xf32>, vector<8x8xf32> -> vector<8x8xf32>
    %62 = vector.extract_strided_slice %3 {offsets = [0, 16], sizes = [8, 8], strides = [1, 1]} : vector<8x32xf32> to vector<8x8xf32>
    %63 = vector.extract_strided_slice %5 {offsets = [0, 16], sizes = [8, 8], strides = [1, 1]} : vector<8x32xf32> to vector<8x8xf32>
    %64 = vector.extract_strided_slice %7 {offsets = [0, 16], sizes = [8, 8], strides = [1, 1]} : vector<8x32xf32> to vector<8x8xf32>
    %65 = tpu.transpose %63, [1, 0] : vector<8x8xf32> -> vector<8x8xf32>
    %cst_36 = arith.constant dense<0.000000e+00> : vector<8x8xf32>
    %66 = tpu.matmul %62, %65, %cst_36 {dimension_numbers = #tpu.dot_dimension_numbers<[1], [0], [0], [1], [0, 0, 1, 1], [], []>} : vector<8x8xf32>, vector<8x8xf32>, vector<8x8xf32> -> vector<8x8xf32>
    %cst_37 = arith.constant 0.000000e+00 : f32
    %67 = vector.broadcast %cst_37 : f32 to vector<8x8xf32>
    %68 = arith.cmpf oeq, %15, %67 : vector<8x8xf32>
    %cst_38 = arith.constant -1.000000e+09 : f32
    %69 = vector.broadcast %cst_38 : f32 to vector<8x8xf32>
    %70 = arith.select %68, %69, %66 : vector<8x8xi1>, vector<8x8xf32>
    %cst_39 = arith.constant dense<0xFF800000> : vector<8xf32>
    %71 = vector.multi_reduction <maximumf>, %70, %cst_39 [1] : vector<8x8xf32> to vector<8xf32>
    %72 = vector.shape_cast %71 : vector<8xf32> to vector<8x1xf32>
    %73 = vector.broadcast %72 : vector<8x1xf32> to vector<8x8xf32>
    %74 = arith.subf %70, %73 : vector<8x8xf32>
    %75 = math.exp %74 : vector<8x8xf32>
    %cst_40 = arith.constant dense<0.000000e+00> : vector<8xf32>
    %76 = vector.multi_reduction <add>, %75, %cst_40 [1] : vector<8x8xf32> to vector<8xf32>
    %77 = vector.shape_cast %76 : vector<8xf32> to vector<8x1xf32>
    %78 = tpu.reciprocal %77 {approx = true} : vector<8x1xf32> -> vector<8x1xf32>
    %79 = vector.broadcast %78 : vector<8x1xf32> to vector<8x8xf32>
    %80 = arith.mulf %75, %79 : vector<8x8xf32>
    %c0_41 = arith.constant 0 : index
    %c2 = arith.constant 2 : index
    %c0_42 = arith.constant 0 : index
    %c0_43 = arith.constant 0 : index
    %81 = vector.load %arg11[%c0_41, %c2, %c0_42, %c0_43] : memref<1x4x8x8xf32, #tpu.memory_space<vmem>>, vector<1x1x8x8xf32>
    %82 = vector.shape_cast %81 : vector<1x1x8x8xf32> to vector<8x8xf32>
    %83 = vector.shape_cast %80 : vector<8x8xf32> to vector<1x1x8x8xf32>
    tpu.vector_store %arg11[%c0_41, %c2, %c0_42, %c0_43], %83 {strides = array<i32>} : memref<1x4x8x8xf32, #tpu.memory_space<vmem>>, vector<1x1x8x8xf32>,
    %cst_44 = arith.constant dense<0.000000e+00> : vector<8x8xf32>
    %84 = tpu.matmul %80, %64, %cst_44 {dimension_numbers = #tpu.dot_dimension_numbers<[1], [0], [0], [1], [0, 0, 1, 1], [], []>} : vector<8x8xf32>, vector<8x8xf32>, vector<8x8xf32> -> vector<8x8xf32>
    %85 = vector.extract_strided_slice %3 {offsets = [0, 24], sizes = [8, 8], strides = [1, 1]} : vector<8x32xf32> to vector<8x8xf32>
    %86 = vector.extract_strided_slice %5 {offsets = [0, 24], sizes = [8, 8], strides = [1, 1]} : vector<8x32xf32> to vector<8x8xf32>
    %87 = vector.extract_strided_slice %7 {offsets = [0, 24], sizes = [8, 8], strides = [1, 1]} : vector<8x32xf32> to vector<8x8xf32>
    %88 = tpu.transpose %86, [1, 0] : vector<8x8xf32> -> vector<8x8xf32>
    %cst_45 = arith.constant dense<0.000000e+00> : vector<8x8xf32>
    %89 = tpu.matmul %85, %88, %cst_45 {dimension_numbers = #tpu.dot_dimension_numbers<[1], [0], [0], [1], [0, 0, 1, 1], [], []>} : vector<8x8xf32>, vector<8x8xf32>, vector<8x8xf32> -> vector<8x8xf32>
    %cst_46 = arith.constant 0.000000e+00 : f32
    %90 = vector.broadcast %cst_46 : f32 to vector<8x8xf32>
    %91 = arith.cmpf oeq, %15, %90 : vector<8x8xf32>
    %cst_47 = arith.constant -1.000000e+09 : f32
    %92 = vector.broadcast %cst_47 : f32 to vector<8x8xf32>
    %93 = arith.select %91, %92, %89 : vector<8x8xi1>, vector<8x8xf32>
    %cst_48 = arith.constant dense<0xFF800000> : vector<8xf32>
    %94 = vector.multi_reduction <maximumf>, %93, %cst_48 [1] : vector<8x8xf32> to vector<8xf32>
    %95 = vector.shape_cast %94 : vector<8xf32> to vector<8x1xf32>
    %96 = vector.broadcast %95 : vector<8x1xf32> to vector<8x8xf32>
    %97 = arith.subf %93, %96 : vector<8x8xf32>
    %98 = math.exp %97 : vector<8x8xf32>
    %cst_49 = arith.constant dense<0.000000e+00> : vector<8xf32>
    %99 = vector.multi_reduction <add>, %98, %cst_49 [1] : vector<8x8xf32> to vector<8xf32>
    %100 = vector.shape_cast %99 : vector<8xf32> to vector<8x1xf32>
    %101 = tpu.reciprocal %100 {approx = true} : vector<8x1xf32> -> vector<8x1xf32>
    %102 = vector.broadcast %101 : vector<8x1xf32> to vector<8x8xf32>
    %103 = arith.mulf %98, %102 : vector<8x8xf32>
    %c0_50 = arith.constant 0 : index
    %c3 = arith.constant 3 : index
    %c0_51 = arith.constant 0 : index
    %c0_52 = arith.constant 0 : index
    %104 = vector.load %arg11[%c0_50, %c3, %c0_51, %c0_52] : memref<1x4x8x8xf32, #tpu.memory_space<vmem>>, vector<1x1x8x8xf32>
    %105 = vector.shape_cast %104 : vector<1x1x8x8xf32> to vector<8x8xf32>
    %106 = vector.shape_cast %103 : vector<8x8xf32> to vector<1x1x8x8xf32>
    tpu.vector_store %arg11[%c0_50, %c3, %c0_51, %c0_52], %106 {strides = array<i32>} : memref<1x4x8x8xf32, #tpu.memory_space<vmem>>, vector<1x1x8x8xf32>,
    %cst_53 = arith.constant dense<0.000000e+00> : vector<8x8xf32>
    %107 = tpu.matmul %103, %87, %cst_53 {dimension_numbers = #tpu.dot_dimension_numbers<[1], [0], [0], [1], [0, 0, 1, 1], [], []>} : vector<8x8xf32>, vector<8x8xf32>, vector<8x8xf32> -> vector<8x8xf32>
    %108 = tpu.concatenate %38, %61, %84, %107 in 1 : vector<8x8xf32>, vector<8x8xf32>, vector<8x8xf32>, vector<8x8xf32> -> vector<8x32xf32>
    %c0_54 = arith.constant 0 : index
    %c0_55 = arith.constant 0 : index
    %109 = vector.load %arg8[%c0_54, %c0_55] : memref<32x32xf32, #tpu.memory_space<vmem>>, vector<32x32xf32>
    %cst_56 = arith.constant dense<0.000000e+00> : vector<8x32xf32>
    %110 = tpu.matmul %108, %109, %cst_56 {dimension_numbers = #tpu.dot_dimension_numbers<[1], [0], [0], [1], [0, 0, 1, 1], [], []>} : vector<8x32xf32>, vector<32x32xf32>, vector<8x32xf32> -> vector<8x32xf32>
    %c0_57 = arith.constant 0 : index
    %c0_58 = arith.constant 0 : index
    %111 = vector.load %arg9[%c0_57, %c0_58] : memref<1x32xf32, #tpu.memory_space<vmem>>, vector<1x32xf32>
    %112 = vector.broadcast %111 : vector<1x32xf32> to vector<8x32xf32>
    %113 = arith.addf %110, %112 : vector<8x32xf32>
    %c0_59 = arith.constant 0 : index
    %c0_60 = arith.constant 0 : index
    %c0_61 = arith.constant 0 : index
    %114 = vector.load %arg4[%c0_59, %c0_60, %c0_61] : memref<1x8x32xf32, #tpu.memory_space<vmem>>, vector<1x8x32xf32>
    %115 = vector.shape_cast %114 : vector<1x8x32xf32> to vector<8x32xf32>
    %116 = arith.addf %115, %113 : vector<8x32xf32>
    %c0_62 = arith.constant 0 : index
    %c0_63 = arith.constant 0 : index
    %c0_64 = arith.constant 0 : index
    %117 = vector.load %arg10[%c0_62, %c0_63, %c0_64] : memref<1x8x32xf32, #tpu.memory_space<vmem>>, vector<1x8x32xf32>
    %118 = vector.shape_cast %117 : vector<1x8x32xf32> to vector<8x32xf32>
    %119 = vector.shape_cast %116 : vector<8x32xf32> to vector<1x8x32xf32>
    tpu.vector_store %arg10[%c0_62, %c0_63, %c0_64], %119 {strides = array<i32>} : memref<1x8x32xf32, #tpu.memory_space<vmem>>, vector<1x8x32xf32>,
    return
  }
  func.func @transform_0(%arg0: i32) -> (i32, i32, i32) {
    %c0_i32 = arith.constant 0 : i32
    %c0_i32_0 = arith.constant 0 : i32
    %c0_i32_1 = arith.constant 0 : i32
    return %arg0, %c0_i32, %c0_i32_0 : i32, i32, i32
  }
  func.func @transform_1(%arg0: i32) -> (i32, i32, i32) {
    %c0_i32 = arith.constant 0 : i32
    %c0_i32_0 = arith.constant 0 : i32
    %c0_i32_1 = arith.constant 0 : i32
    return %arg0, %c0_i32, %c0_i32_0 : i32, i32, i32
  }
  func.func @transform_2(%arg0: i32) -> (i32, i32, i32) {
    %c0_i32 = arith.constant 0 : i32
    %c0_i32_0 = arith.constant 0 : i32
    %c0_i32_1 = arith.constant 0 : i32
    return %arg0, %c0_i32, %c0_i32_0 : i32, i32, i32
  }
  func.func @transform_3(%arg0: i32) -> (i32, i32, i32) {
    %c0_i32 = arith.constant 0 : i32
    %c0_i32_0 = arith.constant 0 : i32
    %c0_i32_1 = arith.constant 0 : i32
    return %arg0, %c0_i32, %c0_i32_0 : i32, i32, i32
  }
  func.func @transform_4(%arg0: i32) -> (i32, i32, i32) {
    %c0_i32 = arith.constant 0 : i32
    %c0_i32_0 = arith.constant 0 : i32
    %c0_i32_1 = arith.constant 0 : i32
    return %arg0, %c0_i32, %c0_i32_0 : i32, i32, i32
  }
  func.func @transform_5(%arg0: i32) -> (i32, i32, i32) {
    %c0_i32 = arith.constant 0 : i32
    %c0_i32_0 = arith.constant 0 : i32
    %c0_i32_1 = arith.constant 0 : i32
    return %arg0, %c0_i32, %c0_i32_0 : i32, i32, i32
  }
  func.func @transform_6(%arg0: i32) -> (i32, i32, i32) {
    %c0_i32 = arith.constant 0 : i32
    %c0_i32_0 = arith.constant 0 : i32
    %c0_i32_1 = arith.constant 0 : i32
    return %arg0, %c0_i32, %c0_i32_0 : i32, i32, i32
  }
  func.func @transform_7(%arg0: i32) -> (i32, i32) {
    %c0_i32 = arith.constant 0 : i32
    %c0_i32_0 = arith.constant 0 : i32
    %c0_i32_1 = arith.constant 0 : i32
    return %c0_i32, %c0_i32_0 : i32, i32
  }
  func.func @transform_8(%arg0: i32) -> (i32, i32) {
    %c0_i32 = arith.constant 0 : i32
    %c0_i32_0 = arith.constant 0 : i32
    %c0_i32_1 = arith.constant 0 : i32
    return %c0_i32, %c0_i32_0 : i32, i32
  }
  func.func @transform_9(%arg0: i32) -> (i32, i32, i32) {
    %c0_i32 = arith.constant 0 : i32
    %c0_i32_0 = arith.constant 0 : i32
    %c0_i32_1 = arith.constant 0 : i32
    return %arg0, %c0_i32, %c0_i32_0 : i32, i32, i32
  }
  func.func @transform_10(%arg0: i32) -> (i32, i32, i32, i32) {
    %c0_i32 = arith.constant 0 : i32
    %c0_i32_0 = arith.constant 0 : i32
    %c0_i32_1 = arith.constant 0 : i32
    %c0_i32_2 = arith.constant 0 : i32
    return %arg0, %c0_i32, %c0_i32_0, %c0_i32_1 : i32, i32, i32, i32
  }
}

module attributes {stable_mosaic.version = 11 : i64} {
  func.func @_ln_qkv_kernel(%arg0: i32, %arg1: memref<8x32xf32, #tpu.memory_space<vmem>>, %arg2: memref<1x32xf32, #tpu.memory_space<vmem>>, %arg3: memref<1x32xf32, #tpu.memory_space<vmem>>, %arg4: memref<32x96xf32, #tpu.memory_space<vmem>>, %arg5: memref<1x96xf32, #tpu.memory_space<vmem>>, %arg6: memref<8x32xf32, #tpu.memory_space<vmem>>, %arg7: memref<8x32xf32, #tpu.memory_space<vmem>>, %arg8: memref<8x32xf32, #tpu.memory_space<vmem>>) attributes {dimension_semantics = [#tpu.dimension_semantics<parallel>], iteration_bounds = array<i64: 2>, scalar_prefetch = 0 : i64, scratch_operands = 0 : i64, tpu.core_type = #tpu.core_type<tc>, window_params = [{transform_indices = @transform_0, window_bounds = array<i64: 8, 32>}, {pipeline_mode = #tpu.pipeline_mode<synchronous>, transform_indices = @transform_1, window_bounds = array<i64: 1, 32>}, {pipeline_mode = #tpu.pipeline_mode<synchronous>, transform_indices = @transform_2, window_bounds = array<i64: 1, 32>}, {pipeline_mode = #tpu.pipeline_mode<synchronous>, transform_indices = @transform_3, window_bounds = array<i64: 32, 96>}, {pipeline_mode = #tpu.pipeline_mode<synchronous>, transform_indices = @transform_4, window_bounds = array<i64: 1, 96>}, {transform_indices = @transform_5, window_bounds = array<i64: 8, 32>}, {transform_indices = @transform_6, window_bounds = array<i64: 8, 32>}, {transform_indices = @transform_7, window_bounds = array<i64: 8, 32>}]} {
    %c0 = arith.constant 0 : index
    %c0_0 = arith.constant 0 : index
    %0 = vector.load %arg1[%c0, %c0_0] : memref<8x32xf32, #tpu.memory_space<vmem>>, vector<8x32xf32>
    %cst = arith.constant dense<0.000000e+00> : vector<8xf32>
    %1 = vector.multi_reduction <add>, %0, %cst [1] : vector<8x32xf32> to vector<8xf32>
    %2 = vector.shape_cast %1 : vector<8xf32> to vector<8x1xf32>
    %cst_1 = arith.constant 3.200000e+01 : f32
    %3 = vector.broadcast %cst_1 : f32 to vector<8x1xf32>
    %4 = arith.divf %2, %3 : vector<8x1xf32>
    %5 = vector.broadcast %4 : vector<8x1xf32> to vector<8x32xf32>
    %6 = arith.subf %0, %5 : vector<8x32xf32>
    %7 = arith.mulf %6, %6 : vector<8x32xf32>
    %cst_2 = arith.constant dense<0.000000e+00> : vector<8xf32>
    %8 = vector.multi_reduction <add>, %7, %cst_2 [1] : vector<8x32xf32> to vector<8xf32>
    %9 = vector.shape_cast %8 : vector<8xf32> to vector<8x1xf32>
    %cst_3 = arith.constant 3.100000e+01 : f32
    %10 = vector.broadcast %cst_3 : f32 to vector<8x1xf32>
    %11 = arith.divf %9, %10 : vector<8x1xf32>
    %12 = math.sqrt %11 : vector<8x1xf32>
    %c0_4 = arith.constant 0 : index
    %c0_5 = arith.constant 0 : index
    %13 = vector.load %arg2[%c0_4, %c0_5] : memref<1x32xf32, #tpu.memory_space<vmem>>, vector<1x32xf32>
    %14 = vector.broadcast %13 : vector<1x32xf32> to vector<8x32xf32>
    %15 = arith.mulf %14, %6 : vector<8x32xf32>
    %cst_6 = arith.constant 9.99999997E-7 : f32
    %16 = vector.broadcast %cst_6 : f32 to vector<8x1xf32>
    %17 = arith.addf %12, %16 : vector<8x1xf32>
    %18 = vector.broadcast %17 : vector<8x1xf32> to vector<8x32xf32>
    %19 = arith.divf %15, %18 : vector<8x32xf32>
    %c0_7 = arith.constant 0 : index
    %c0_8 = arith.constant 0 : index
    %20 = vector.load %arg3[%c0_7, %c0_8] : memref<1x32xf32, #tpu.memory_space<vmem>>, vector<1x32xf32>
    %21 = vector.broadcast %20 : vector<1x32xf32> to vector<8x32xf32>
    %22 = arith.addf %19, %21 : vector<8x32xf32>
    %c0_9 = arith.constant 0 : index
    %c0_10 = arith.constant 0 : index
    %23 = vector.load %arg4[%c0_9, %c0_10] : memref<32x96xf32, #tpu.memory_space<vmem>>, vector<32x96xf32>
    %cst_11 = arith.constant dense<0.000000e+00> : vector<8x96xf32>
    %24 = tpu.matmul %22, %23, %cst_11 {dimension_numbers = #tpu.dot_dimension_numbers<[1], [0], [0], [1], [0, 0, 1, 1], [], []>} : vector<8x32xf32>, vector<32x96xf32>, vector<8x96xf32> -> vector<8x96xf32>
    %c0_12 = arith.constant 0 : index
    %c0_13 = arith.constant 0 : index
    %25 = vector.load %arg5[%c0_12, %c0_13] : memref<1x96xf32, #tpu.memory_space<vmem>>, vector<1x96xf32>
    %26 = vector.broadcast %25 : vector<1x96xf32> to vector<8x96xf32>
    %27 = arith.addf %24, %26 : vector<8x96xf32>
    %28 = vector.extract_strided_slice %27 {offsets = [0, 0], sizes = [8, 32], strides = [1, 1]} : vector<8x96xf32> to vector<8x32xf32>
    %c0_14 = arith.constant 0 : index
    %c0_15 = arith.constant 0 : index
    %29 = vector.load %arg6[%c0_14, %c0_15] : memref<8x32xf32, #tpu.memory_space<vmem>>, vector<8x32xf32>
    tpu.vector_store %arg6[%c0_14, %c0_15], %28 {strides = array<i32>} : memref<8x32xf32, #tpu.memory_space<vmem>>, vector<8x32xf32>,
    %30 = vector.extract_strided_slice %27 {offsets = [0, 32], sizes = [8, 32], strides = [1, 1]} : vector<8x96xf32> to vector<8x32xf32>
    %c0_16 = arith.constant 0 : index
    %c0_17 = arith.constant 0 : index
    %31 = vector.load %arg7[%c0_16, %c0_17] : memref<8x32xf32, #tpu.memory_space<vmem>>, vector<8x32xf32>
    tpu.vector_store %arg7[%c0_16, %c0_17], %30 {strides = array<i32>} : memref<8x32xf32, #tpu.memory_space<vmem>>, vector<8x32xf32>,
    %32 = vector.extract_strided_slice %27 {offsets = [0, 64], sizes = [8, 32], strides = [1, 1]} : vector<8x96xf32> to vector<8x32xf32>
    %c0_18 = arith.constant 0 : index
    %c0_19 = arith.constant 0 : index
    %33 = vector.load %arg8[%c0_18, %c0_19] : memref<8x32xf32, #tpu.memory_space<vmem>>, vector<8x32xf32>
    tpu.vector_store %arg8[%c0_18, %c0_19], %32 {strides = array<i32>} : memref<8x32xf32, #tpu.memory_space<vmem>>, vector<8x32xf32>,
    return
  }
  func.func @transform_0(%arg0: i32) -> (i32, i32) {
    %c0_i32 = arith.constant 0 : i32
    %c0_i32_0 = arith.constant 0 : i32
    return %arg0, %c0_i32 : i32, i32
  }
  func.func @transform_1(%arg0: i32) -> (i32, i32) {
    %c0_i32 = arith.constant 0 : i32
    %c0_i32_0 = arith.constant 0 : i32
    %c0_i32_1 = arith.constant 0 : i32
    return %c0_i32, %c0_i32_0 : i32, i32
  }
  func.func @transform_2(%arg0: i32) -> (i32, i32) {
    %c0_i32 = arith.constant 0 : i32
    %c0_i32_0 = arith.constant 0 : i32
    %c0_i32_1 = arith.constant 0 : i32
    return %c0_i32, %c0_i32_0 : i32, i32
  }
  func.func @transform_3(%arg0: i32) -> (i32, i32) {
    %c0_i32 = arith.constant 0 : i32
    %c0_i32_0 = arith.constant 0 : i32
    %c0_i32_1 = arith.constant 0 : i32
    return %c0_i32, %c0_i32_0 : i32, i32
  }
  func.func @transform_4(%arg0: i32) -> (i32, i32) {
    %c0_i32 = arith.constant 0 : i32
    %c0_i32_0 = arith.constant 0 : i32
    %c0_i32_1 = arith.constant 0 : i32
    return %c0_i32, %c0_i32_0 : i32, i32
  }
  func.func @transform_5(%arg0: i32) -> (i32, i32) {
    %c0_i32 = arith.constant 0 : i32
    %c0_i32_0 = arith.constant 0 : i32
    return %arg0, %c0_i32 : i32, i32
  }
  func.func @transform_6(%arg0: i32) -> (i32, i32) {
    %c0_i32 = arith.constant 0 : i32
    %c0_i32_0 = arith.constant 0 : i32
    return %arg0, %c0_i32 : i32, i32
  }
  func.func @transform_7(%arg0: i32) -> (i32, i32) {
    %c0_i32 = arith.constant 0 : i32
    %c0_i32_0 = arith.constant 0 : i32
    return %arg0, %c0_i32 : i32, i32
  }
}

module attributes {stable_mosaic.version = 11 : i64} {
  func.func @_ln_ffn_kernel(%arg0: i32, %arg1: memref<8x32xf32, #tpu.memory_space<vmem>>, %arg2: memref<1x32xf32, #tpu.memory_space<vmem>>, %arg3: memref<1x32xf32, #tpu.memory_space<vmem>>, %arg4: memref<32x64xf32, #tpu.memory_space<vmem>>, %arg5: memref<1x64xf32, #tpu.memory_space<vmem>>, %arg6: memref<64x32xf32, #tpu.memory_space<vmem>>, %arg7: memref<1x32xf32, #tpu.memory_space<vmem>>, %arg8: memref<8x32xf32, #tpu.memory_space<vmem>>) attributes {dimension_semantics = [#tpu.dimension_semantics<parallel>], iteration_bounds = array<i64: 2>, scalar_prefetch = 0 : i64, scratch_operands = 0 : i64, tpu.core_type = #tpu.core_type<tc>, window_params = [{transform_indices = @transform_0, window_bounds = array<i64: 8, 32>}, {pipeline_mode = #tpu.pipeline_mode<synchronous>, transform_indices = @transform_1, window_bounds = array<i64: 1, 32>}, {pipeline_mode = #tpu.pipeline_mode<synchronous>, transform_indices = @transform_2, window_bounds = array<i64: 1, 32>}, {pipeline_mode = #tpu.pipeline_mode<synchronous>, transform_indices = @transform_3, window_bounds = array<i64: 32, 64>}, {pipeline_mode = #tpu.pipeline_mode<synchronous>, transform_indices = @transform_4, window_bounds = array<i64: 1, 64>}, {pipeline_mode = #tpu.pipeline_mode<synchronous>, transform_indices = @transform_5, window_bounds = array<i64: 64, 32>}, {pipeline_mode = #tpu.pipeline_mode<synchronous>, transform_indices = @transform_6, window_bounds = array<i64: 1, 32>}, {transform_indices = @transform_7, window_bounds = array<i64: 8, 32>}]} {
    %c0 = arith.constant 0 : index
    %c0_0 = arith.constant 0 : index
    %0 = vector.load %arg1[%c0, %c0_0] : memref<8x32xf32, #tpu.memory_space<vmem>>, vector<8x32xf32>
    %cst = arith.constant dense<0.000000e+00> : vector<8xf32>
    %1 = vector.multi_reduction <add>, %0, %cst [1] : vector<8x32xf32> to vector<8xf32>
    %2 = vector.shape_cast %1 : vector<8xf32> to vector<8x1xf32>
    %cst_1 = arith.constant 3.200000e+01 : f32
    %3 = vector.broadcast %cst_1 : f32 to vector<8x1xf32>
    %4 = arith.divf %2, %3 : vector<8x1xf32>
    %5 = vector.broadcast %4 : vector<8x1xf32> to vector<8x32xf32>
    %6 = arith.subf %0, %5 : vector<8x32xf32>
    %7 = arith.mulf %6, %6 : vector<8x32xf32>
    %cst_2 = arith.constant dense<0.000000e+00> : vector<8xf32>
    %8 = vector.multi_reduction <add>, %7, %cst_2 [1] : vector<8x32xf32> to vector<8xf32>
    %9 = vector.shape_cast %8 : vector<8xf32> to vector<8x1xf32>
    %cst_3 = arith.constant 3.100000e+01 : f32
    %10 = vector.broadcast %cst_3 : f32 to vector<8x1xf32>
    %11 = arith.divf %9, %10 : vector<8x1xf32>
    %12 = math.sqrt %11 : vector<8x1xf32>
    %c0_4 = arith.constant 0 : index
    %c0_5 = arith.constant 0 : index
    %13 = vector.load %arg2[%c0_4, %c0_5] : memref<1x32xf32, #tpu.memory_space<vmem>>, vector<1x32xf32>
    %14 = vector.broadcast %13 : vector<1x32xf32> to vector<8x32xf32>
    %15 = arith.mulf %14, %6 : vector<8x32xf32>
    %cst_6 = arith.constant 9.99999997E-7 : f32
    %16 = vector.broadcast %cst_6 : f32 to vector<8x1xf32>
    %17 = arith.addf %12, %16 : vector<8x1xf32>
    %18 = vector.broadcast %17 : vector<8x1xf32> to vector<8x32xf32>
    %19 = arith.divf %15, %18 : vector<8x32xf32>
    %c0_7 = arith.constant 0 : index
    %c0_8 = arith.constant 0 : index
    %20 = vector.load %arg3[%c0_7, %c0_8] : memref<1x32xf32, #tpu.memory_space<vmem>>, vector<1x32xf32>
    %21 = vector.broadcast %20 : vector<1x32xf32> to vector<8x32xf32>
    %22 = arith.addf %19, %21 : vector<8x32xf32>
    %c0_9 = arith.constant 0 : index
    %c0_10 = arith.constant 0 : index
    %23 = vector.load %arg4[%c0_9, %c0_10] : memref<32x64xf32, #tpu.memory_space<vmem>>, vector<32x64xf32>
    %cst_11 = arith.constant dense<0.000000e+00> : vector<8x64xf32>
    %24 = tpu.matmul %22, %23, %cst_11 {dimension_numbers = #tpu.dot_dimension_numbers<[1], [0], [0], [1], [0, 0, 1, 1], [], []>} : vector<8x32xf32>, vector<32x64xf32>, vector<8x64xf32> -> vector<8x64xf32>
    %c0_12 = arith.constant 0 : index
    %c0_13 = arith.constant 0 : index
    %25 = vector.load %arg5[%c0_12, %c0_13] : memref<1x64xf32, #tpu.memory_space<vmem>>, vector<1x64xf32>
    %26 = vector.broadcast %25 : vector<1x64xf32> to vector<8x64xf32>
    %27 = arith.addf %24, %26 : vector<8x64xf32>
    %cst_14 = arith.constant 0.000000e+00 : f32
    %28 = vector.broadcast %cst_14 : f32 to vector<8x64xf32>
    %29 = arith.maximumf %27, %28 : vector<8x64xf32>
    %c0_15 = arith.constant 0 : index
    %c0_16 = arith.constant 0 : index
    %30 = vector.load %arg6[%c0_15, %c0_16] : memref<64x32xf32, #tpu.memory_space<vmem>>, vector<64x32xf32>
    %cst_17 = arith.constant dense<0.000000e+00> : vector<8x32xf32>
    %31 = tpu.matmul %29, %30, %cst_17 {dimension_numbers = #tpu.dot_dimension_numbers<[1], [0], [0], [1], [0, 0, 1, 1], [], []>} : vector<8x64xf32>, vector<64x32xf32>, vector<8x32xf32> -> vector<8x32xf32>
    %c0_18 = arith.constant 0 : index
    %c0_19 = arith.constant 0 : index
    %32 = vector.load %arg7[%c0_18, %c0_19] : memref<1x32xf32, #tpu.memory_space<vmem>>, vector<1x32xf32>
    %33 = vector.broadcast %32 : vector<1x32xf32> to vector<8x32xf32>
    %34 = arith.addf %31, %33 : vector<8x32xf32>
    %35 = arith.addf %0, %34 : vector<8x32xf32>
    %c0_20 = arith.constant 0 : index
    %c0_21 = arith.constant 0 : index
    %36 = vector.load %arg8[%c0_20, %c0_21] : memref<8x32xf32, #tpu.memory_space<vmem>>, vector<8x32xf32>
    tpu.vector_store %arg8[%c0_20, %c0_21], %35 {strides = array<i32>} : memref<8x32xf32, #tpu.memory_space<vmem>>, vector<8x32xf32>,
    return
  }
  func.func @transform_0(%arg0: i32) -> (i32, i32) {
    %c0_i32 = arith.constant 0 : i32
    %c0_i32_0 = arith.constant 0 : i32
    return %arg0, %c0_i32 : i32, i32
  }
  func.func @transform_1(%arg0: i32) -> (i32, i32) {
    %c0_i32 = arith.constant 0 : i32
    %c0_i32_0 = arith.constant 0 : i32
    %c0_i32_1 = arith.constant 0 : i32
    return %c0_i32, %c0_i32_0 : i32, i32
  }
  func.func @transform_2(%arg0: i32) -> (i32, i32) {
    %c0_i32 = arith.constant 0 : i32
    %c0_i32_0 = arith.constant 0 : i32
    %c0_i32_1 = arith.constant 0 : i32
    return %c0_i32, %c0_i32_0 : i32, i32
  }
  func.func @transform_3(%arg0: i32) -> (i32, i32) {
    %c0_i32 = arith.constant 0 : i32
    %c0_i32_0 = arith.constant 0 : i32
    %c0_i32_1 = arith.constant 0 : i32
    return %c0_i32, %c0_i32_0 : i32, i32
  }
  func.func @transform_4(%arg0: i32) -> (i32, i32) {
    %c0_i32 = arith.constant 0 : i32
    %c0_i32_0 = arith.constant 0 : i32
    %c0_i32_1 = arith.constant 0 : i32
    return %c0_i32, %c0_i32_0 : i32, i32
  }
  func.func @transform_5(%arg0: i32) -> (i32, i32) {
    %c0_i32 = arith.constant 0 : i32
    %c0_i32_0 = arith.constant 0 : i32
    %c0_i32_1 = arith.constant 0 : i32
    return %c0_i32, %c0_i32_0 : i32, i32
  }
  func.func @transform_6(%arg0: i32) -> (i32, i32) {
    %c0_i32 = arith.constant 0 : i32
    %c0_i32_0 = arith.constant 0 : i32
    %c0_i32_1 = arith.constant 0 : i32
    return %c0_i32, %c0_i32_0 : i32, i32
  }
  func.func @transform_7(%arg0: i32) -> (i32, i32) {
    %c0_i32 = arith.constant 0 : i32
    %c0_i32_0 = arith.constant 0 : i32
    return %arg0, %c0_i32 : i32, i32
  }
}

</mosaic_0001>

<bundles_post_ra>
// kernel: encoder_layer_forward.3
= control target key start
LH: loop header
LB: loop body
LE: loop exit
PB: predicated region body
PF: predicated region fallthrough
CT: control target
= control target key end

     0   :  { %s651_s24 = smov 0   ;;  %s707_s0 = inlined_call_operand.vmem [shape: f32[16,32], index: 0, kind: input, shape index: {}]   ;;  %s708_s1 = inlined_call_operand.vmem [shape: f32[1,32], index: 1, kind: input, shape index: {}]   ;;  %s709_s2 = inlined_call_operand.vmem [shape: f32[1,32], index: 2, kind: input, shape index: {}]   ;;  %s710_s3 = inlined_call_operand.vmem [shape: f32[32,96], index: 3, kind: input, shape index: {}]   ;;  %s711_s4 = inlined_call_operand.vmem [shape: f32[1,96], index: 4, kind: input, shape index: {}]   ;;  %s712_s5 = inlined_call_operand.vmem [shape: f32[16,32], index: 5, kind: output, shape index: {0}]   ;;  %s713_s6 = inlined_call_operand.vmem [shape: f32[16,32], index: 6, kind: output, shape index: {1}]   ;;  %s714_s7 = inlined_call_operand.vmem [shape: f32[16,32], index: 7, kind: output, shape index: {2}]  }
   0x1 LB: > { %s544_s25 = sadd.s32 4294967295, %s604_s24   ;;  %p548_p0 = scmp.ge.s32.totalorder %s604_s24, 1  ;;  %s604_s24 = sphi %s651_s24, %s18_s24  }
   0x2   : > { %p241_p1 = scmp.lt.s32.totalorder %s604_s24, 3 }
   0x4   : > { %p242_p2 = pnand %p548_p0, %p241_p1 }
   0x5   : > { %p279_p3 = scmp.lt.s32.totalorder (!%p242_p2), %s544_s25, 1  ;;  %vm296_vm0 = vcmask (!%p242_p2), 261120   ;;  %v335_v7 = vld [vmem:[%s710_s3] sm:$0xff] (!%p242_p2)  ;;  %v336_v8 = vld [vmem:[%s710_s3 + $0x8] sm:$0xff] (!%p242_p2)  ;;  %v337_v9 = vld [vmem:[%s710_s3 + $0x10] sm:$0xff] (!%p242_p2)  ;;  %v606_v10 = vmov (!%p242_p2), 0.0|0.0  }
   0x6   : > { %245 = sbr.rel (%p242_p2) target bundleno = 677 (0x2a5), region = 40  ;;  %575 = vmatprep.subr.bf16.mxu0 (!%p242_p2), %v606_v10  ;;  %v576_v11 = vpack.c.bf16 (!%p242_p2), %v336_v8, %v335_v7  ;;  %v338_v12 = vld [vmem:[%s710_s3 + $0x18] sm:$0xff] (!%p242_p2)  ;;  %vm607_vm1 = vmmov (!%p242_p2), 0   ;;  %v608_v13 = vmov (!%p242_p2), 0.0   ;;  %v553_v23 = vld [vmem:[%s708_s1] ss:$0 sm:$0xff] (!%p242_p2) }
   0x7   : > { %572 = vmatprep.mubr.msk.f32.mxu0 (!%p242_p2), %vm607_vm1, %v608_v13  ;;  %v579_v14 = vpack.c.bf16 (!%p242_p2), %v338_v12, %v337_v9  ;;  %v554_v26 = vld [vmem:[%s709_s2] ss:$0 sm:$0xff] (!%p242_p2)  ;;  %s610_s27 = smov (!%p242_p2), 64  }
   0x8   : > { %577 = vmatpush3.bf16.msra.mxu0 (!%p242_p2), %v576_v11  ;;  %v555_v29 = vld [vmem:[%s711_s4] ss:$0 sm:$0xff] (!%p242_p2) }
   0x9   : > { %578 = vmatprep.subr.bf16.mxu0 (!%p242_p2), %v606_v10 }
   0xc   : > { %580 = vmatpush3.bf16.msra.mxu0 (!%p242_p2), %v579_v14 }
   0xd   : > { %s716_s25 = smov (!%p279_p3, %s544_s25), 1 }
   0xe   : > { %s659_s26 = sshll.u32 %s716_s25, 3  ;;  %s609_s25 = smov 96  }
   0xf   : > { %s282_s29 = scalar_lea.vmem %s707_s0, %s659_s26  ;;  %s286_s23 = scalar_lea.vmem %s712_s5, %s659_s26 }
  0x10   : > { %v295_v0 = vld [vmem:[%s282_s29] sm:$0xff]  ;;  %s290_s30 = scalar_lea.vmem %s713_s6, %s659_s26  ;;  %s294_s10 = scalar_lea.vmem %s714_s7, %s659_s26 }
  0x11   : > { %v297_v1 = vsel %vm296_vm0, %v295_v0, 0.0 }
  0x12   : > { %298 = vadd.xlane.f32.xlu0 %v297_v1 }
  0x9f   : > { %v299_v2 = vpop.xlane.xlu0 %298 }
  0xa0   : > { %v301_v3 = vmul.f32 0.03125, %v299_v2 }
  0xa2   : > { %v302_v4 = vsub.f32 %v295_v0, %v301_v3 }
  0xa4   : > { %v303_v5 = vmul.f32 %v302_v4, %v302_v4  ;;  %v323_v24 = vmul.f32 %v553_v23, %v302_v4 }
  0xa6   : > { %v304_v6 = vsel %vm296_vm0, %v303_v5, 0.0 }
  0xa7   : > { %305 = vadd.xlane.f32.xlu0 %v304_v6 }
 0x134   : > { %v306_v15 = vpop.xlane.xlu0 %305 }
 0x135   : > { %v308_v16 = vmul.f32 0.032258064, %v306_v15 }
 0x137   : > { %594 = vrsqrt.f32 %v308_v16  ;;  %vm311_vm2 = vcmp.eq.f32.partialorder %v308_v16, inf  ;;  %v314_v19 = vand.u32 2147483648, %v308_v16  ;;  %vm313_vm3 = vcmp.eq.f32.partialorder %v308_v16, 0.0 }
 0x141   : > { %v595_v17 = vpop.eup %594 }
 0x142   : > { %v310_v18 = vmul.f32 %v595_v17, %v308_v16 }
 0x144   : > { %v312_v20 = vsel %vm311_vm2, %v308_v16, %v310_v18 }
 0x145   : > { %v315_v21 = vsel %vm313_vm3, %v314_v19, %v312_v20 }
 0x146   : > { %v324_v22 = vadd.f32 1e-06, %v315_v21 }
 0x148   : > { %596 = vrcp.f32 %v324_v22 }
 0x152   : > { %v597_v25 = vpop.eup %596 }
 0x153   : > { %v326_v27 = vmul.f32 %v597_v25, %v323_v24 }
 0x155   : > { %v334_v28 = vadd.f32 %v554_v26, %v326_v27 }
 0x157   : > { %573 = vmatmul.mubr.msk.f32.vlgmr.msra.gmra.mrb[0].mxu0 %vm296_vm0, %v334_v28 }
 0x22a   : > { %v415_v30 = vpop.f32.mrb[0].mxu0 }
 0x22b   : > { %v416_v31 = vadd.f32 %v555_v29, %v415_v30  ;;  %v574_v32 = vpop.f32.mrb[1].mxu0 }
 0x22d   : > { %419 = vst.msk [vmem:[%s286_s23] sm:$0xff] %vm296_vm0, %v416_v31  ;;  %421 = vrot.lane.b32.xlu1 %v416_v31, %s609_s25 }
 0x231   : > { %425 = vrot.lane.b32.xlu1 %v416_v31, %s610_s27 }
 0x29f   : > { %v422_v33 = vpop.permute.xlu1 %421 }
 0x2a0   : > { %424 = vst.msk [vmem:[%s290_s30] sm:$0xff] %vm296_vm0, %v422_v33 }
 0x2a3   : > { %v426_v34 = vpop.permute.xlu1 %425 }
 0x2a4   : > { %428 = vst.msk [vmem:[%s294_s10] sm:$0xff] %vm296_vm0, %v426_v34 }
 0x2a5 PF: > { %s18_s24 = sadd.s32 1, %s604_s24  }
 0x2a6   : > { %p15_p4 = scmp.ge.s32.totalorder %s18_s24, 4  }
 0x2a8   :  { %17 = sbr.rel (!%p15_p4) target bundleno = 1 (0x1), region = 94 }

// kernel: encoder_layer_forward.5
= control target key start
LH: loop header
LB: loop body
LE: loop exit
PB: predicated region body
PF: predicated region fallthrough
CT: control target
= control target key end

     0   :  { %12 = vsyncpa [#allocation3], 0  ;;  %s952_s0 = inlined_call_operand.vmem [shape: f32[16,32], index: 0, kind: input, shape index: {}]   ;;  %s953_s1 = inlined_call_operand.vmem [shape: f32[1,32], index: 1, kind: input, shape index: {}]   ;;  %s954_s2 = inlined_call_operand.vmem [shape: f32[1,32], index: 2, kind: input, shape index: {}]   ;;  %s955_s3 = inlined_call_operand.vmem [shape: f32[32,64], index: 3, kind: input, shape index: {}]   ;;  %s956_s4 = inlined_call_operand.vmem [shape: f32[1,64], index: 4, kind: input, shape index: {}]   ;;  %s957_s5 = inlined_call_operand.vmem [shape: f32[64,32], index: 5, kind: input, shape index: {}]   ;;  %s958_s6 = inlined_call_operand.vmem [shape: f32[1,32], index: 6, kind: input, shape index: {}]   ;;  %s959_s7 = inlined_call_operand.hbm [shape: f32[16,32], index: 7, kind: output, shape index: {}]  }
   0x1   :  { %14 = vsyncpa [#allocation3 + $0x1], 0  ;;  %s795_s24 = smov 0   ;;  %s797_s25 = smov 0  }
   0x2   :  { %s799_s26 = smov 0   ;;  %s801_s27 = smov 0  }
   0x3 LB: > { %s816_s28 = sadd.s32 4294967295, %s749_s27   ;;  %s563_s29 = sadd.s32 4294967294, %s749_s27   ;;  %s749_s27 = sphi %s801_s27, %s965_s27   ;;  %s745_s26 = sphi %s799_s26, %s964_s26   ;;  %s741_s25 = sphi %s797_s25, %s963_s25   ;;  %s737_s24 = sphi %s795_s24, %s962_s24  }
   0x4   : > { %s820_s30 = sadd.s32 1, %s749_s27   ;;  %s179_s8 = sadd.s32 1, %s745_s26 }
   0x5   : > { %s176_s9 = ssub.s32 %s749_s27, %s820_s30  ;;  %p189_p0 = scmp.ne.s32.totalorder %s745_s26, %s741_s25 }
   0x6   : > { %p177_p1 = scmp.eq.s32.totalorder %s176_s9, 0  ;;  %p190_p2 = scmp.eq.s32.totalorder %s816_s28, 1 }
   0x7   : > { %p195_p3 = scmp.ne.s32.totalorder %s741_s25, %s737_s24  ;;  %p196_p4 = scmp.eq.s32.totalorder %s563_s29, 1 }
   0x8   : > { %s831_s10 = scalar_select %p177_p1, %s745_s26, %s179_s8  }
   0x9   : > { %p833_p5 = por %p190_p2, %p189_p0  ;;  %p837_p6 = por %p196_p4, %p195_p3 }
   0xa   : > { %p566_p7 = scmp.ge.s32.totalorder %s749_s27, 1  ;;  %p239_p8 = scmp.lt.s32.totalorder %s749_s27, 3 }
   0xc   : > { %p240_p9 = pnand %p566_p7, %p239_p8 }
   0xd   : > { %p270_p10 = scmp.lt.s32.totalorder (!%p240_p9), %s816_s28, 1  ;;  %vm275_vm0 = vcmask (!%p240_p9), 261120   ;;  %v314_v7 = vld [vmem:[%s955_s3] sm:$0xff] (!%p240_p9)  ;;  %v315_v8 = vld [vmem:[%s955_s3 + $0x8] sm:$0xff] (!%p240_p9)  ;;  %v316_v9 = vld [vmem:[%s955_s3 + $0x10] sm:$0xff] (!%p240_p9)  ;;  %v751_v10 = vmov (!%p240_p9), 0.0|0.0  }
   0xe   : > { %243 = sbr.rel (%p240_p9) target bundleno = 798 (0x31e), region = 48  ;;  %623 = vmatprep.subr.bf16.mxu0 (!%p240_p9), %v751_v10  ;;  %v624_v11 = vpack.c.bf16 (!%p240_p9), %v315_v8, %v314_v7  ;;  %v317_v12 = vld [vmem:[%s955_s3 + $0x18] sm:$0xff] (!%p240_p9)  ;;  %vm752_vm1 = vmmov (!%p240_p9), 0   ;;  %v753_v13 = vmov (!%p240_p9), 0.0   ;;  %629 = vmatprep.subr.bf16.mxu1 (!%p240_p9), %v751_v10  ;;  %v399_v15 = vld [vmem:[%s957_s5] sm:$0xff] (!%p240_p9)  ;;  %v400_v16 = vld [vmem:[%s957_s5 + $0x8] sm:$0xff] (!%p240_p9) }
   0xf   : > { %601 = vmatprep.mubr.msk.f32.mxu0 (!%p240_p9), %vm752_vm1, %v753_v13  ;;  %620 = vmatprep.mubr.msk.f32.mxu1 (!%p240_p9), %vm752_vm1, %v753_v13  ;;  %v627_v14 = vpack.c.bf16 (!%p240_p9), %v317_v12, %v316_v9  ;;  %v401_v17 = vld [vmem:[%s957_s5 + $0x10] sm:$0xff] (!%p240_p9)  ;;  %v630_v18 = vpack.c.bf16 (!%p240_p9), %v400_v16, %v399_v15  ;;  %v402_v19 = vld [vmem:[%s957_s5 + $0x18] sm:$0xff] (!%p240_p9)  ;;  %v403_v21 = vld [vmem:[%s957_s5 + $0x20] sm:$0xff] (!%p240_p9)  ;;  %vm414_vm4 = vcmask (!%p240_p9), 523264   ;;  %s267_s20 = sand.u32 (!%p240_p9), 1, %s741_s25   ;;  %s576_s29 = sshll.u32 (!%p240_p9), %s816_s28, 7 }
  0x10   : > { %625 = vmatpush3.bf16.msra.mxu0 (!%p240_p9), %v624_v11  ;;  %v633_v20 = vpack.c.bf16 (!%p240_p9), %v402_v19, %v401_v17  ;;  %v404_v22 = vld [vmem:[%s957_s5 + $0x28] sm:$0xff] (!%p240_p9)  ;;  %v569_v32 = vld [vmem:[%s953_s1] ss:$0 sm:$0xff] (!%p240_p9)  ;;  %v405_v38 = vld [vmem:[%s957_s5 + $0x30] sm:$0xff] (!%p240_p9)  ;;  %s567_s21 = sshll.u32 (!%p240_p9), %s267_s20, 3  ;;  %s909_s15 = scalar_lea.hbm (!%p240_p9), %s959_s7, %s576_s29 }
  0x11   : > { %626 = vmatprep.subr.bf16.mxu0 (!%p240_p9), %v751_v10  ;;  %631 = vmatpush3.bf16.msra.mxu1 (!%p240_p9), %v630_v18  ;;  %v636_v23 = vpack.c.bf16 (!%p240_p9), %v404_v22, %v403_v21  ;;  %v570_v35 = vld [vmem:[%s954_s2] ss:$0 sm:$0xff] (!%p240_p9)  ;;  %v406_v39 = vld [vmem:[%s957_s5 + $0x38] sm:$0xff] (!%p240_p9)  ;;  %s269_s8 = scalar_lea.vmem (!%p240_p9), [#allocation2], %s567_s21  ;;  %s491_s16 = scalar_lea.sflag (!%p240_p9), [#allocation3], %s267_s20 }
  0x12   : > { %632 = vmatprep.subr.bf16.mxu1 (!%p240_p9), %v751_v10  ;;  %v639_v40 = vpack.c.bf16 (!%p240_p9), %v406_v39, %v405_v38  ;;  %v571_v41 = vld [vmem:[%s956_s4] ss:$0 sm:$0xff] (!%p240_p9)  ;;  %s504_s9 = sshll.u32 (!%p240_p9), %s269_s8, 4  ;;  %s911_s9 = int_to_ptr.vmem [resolvable:$true] %s504_s9 }
  0x13   : > { %v573_v46 = vld [vmem:[%s958_s6] ss:$0 sm:$0xff] (!%p240_p9) }
  0x14   : > { %628 = vmatpush3.bf16.msra.mxu0 (!%p240_p9), %v627_v14 }
  0x15   : > { %s271_s13 = scalar_select %p270_p10, %s816_s28, 1  ;;  %634 = vmatpush3.bf16.msra.mxu1 %v633_v20 }
  0x16   : > { %635 = vmatprep.subr.bf16.mxu1 %v751_v10  ;;  %s687_s28 = scalar_lea.vmem %s911_s9, 128 }
  0x17   : > { %s568_s14 = sshll.u32 %s271_s13, 3  ;;  %p688_p11 = scmp.ne.s32.totalorder %s911_s9, %s687_s28 }
  0x18   : > { %s273_s17 = scalar_lea.vmem %s952_s0, %s568_s14 }
  0x19   : > { %v848_v0 = vld [vmem:[%s273_s17] sm:$0xff]  ;;  %637 = vmatpush3.bf16.msra.mxu1 %v636_v23  ;;  %p689_p12 = pnand %p688_p11, %p833_p5  ;;  %s754_s17 = smov [#allocation2]  }
  0x1a   : > { %v276_v1 = vsel %vm275_vm0, %v848_v0, 0.0  ;;  %638 = vmatprep.subr.bf16.mxu1 %v751_v10  ;;  %s691_s18 = sshll.u32 %s754_s17, 4  ;;  %s692_s18 = int_to_ptr.vmem [resolvable:$false] %s691_s18 }
  0x1b   : > { %277 = vadd.xlane.f32.xlu0 %v276_v1  ;;  %p690_p13 = pneg %p689_p12  ;;  %s693_s19 = scalar_lea.vmem %s692_s18, 256 }
  0x1c   : > { %p694_p0 = scmp.lt.s32.totalorder %s911_s9, %s692_s18  ;;  %p695_p1 = scmp.lt.s32.totalorder %s693_s19, %s687_s28 }
  0x1d   : > { %640 = vmatpush3.bf16.msra.mxu1 %v639_v40 }
  0x1e   : > { %p696_p2 = por %p695_p1, %p694_p0 }
  0x20   : > { %p697_p3 = pnand %p696_p2, %p690_p13 }
  0xa8   : > { %v278_v2 = vpop.xlane.xlu0 %277 }
  0xa9   : > { %v280_v3 = vmul.f32 0.03125, %v278_v2 }
  0xab   : > { %v281_v4 = vsub.f32 %v848_v0, %v280_v3 }
  0xad   : > { %v282_v5 = vmul.f32 %v281_v4, %v281_v4  ;;  %v302_v33 = vmul.f32 %v569_v32, %v281_v4 }
  0xaf   : > { %v283_v6 = vsel %vm275_vm0, %v282_v5, 0.0 }
  0xb0   : > { %284 = vadd.xlane.f32.xlu0 %v283_v6 }
 0x13d   : > { %v285_v24 = vpop.xlane.xlu0 %284 }
 0x13e   : > { %v287_v25 = vmul.f32 0.032258064, %v285_v24 }
 0x140   : > { %683 = vrsqrt.f32 %v287_v25  ;;  %vm290_vm2 = vcmp.eq.f32.partialorder %v287_v25, inf  ;;  %v293_v28 = vand.u32 2147483648, %v287_v25  ;;  %vm292_vm3 = vcmp.eq.f32.partialorder %v287_v25, 0.0 }
 0x14a   : > { %v684_v26 = vpop.eup %683 }
 0x14b   : > { %v289_v27 = vmul.f32 %v684_v26, %v287_v25 }
 0x14d   : > { %v291_v29 = vsel %vm290_vm2, %v287_v25, %v289_v27 }
 0x14e   : > { %v294_v30 = vsel %vm292_vm3, %v293_v28, %v291_v29 }
 0x14f   : > { %v303_v31 = vadd.f32 1e-06, %v294_v30 }
 0x151   : > { %685 = vrcp.f32 %v303_v31 }
 0x15b   : > { %v686_v34 = vpop.eup %685 }
 0x15c   : > { %v305_v36 = vmul.f32 %v686_v34, %v302_v33 }
 0x15e   : > { %v313_v37 = vadd.f32 %v570_v35, %v305_v36 }
 0x160   : > { %602 = vmatmul.mubr.msk.f32.vlgmr.msra.gmra.mrb[0].mxu0 %vm275_vm0, %v313_v37 }
 0x233   : > { %v394_v42 = vpop.f32.mrb[0].mxu0 }
 0x234   : > { %v395_v43 = vadd.f32 %v571_v41, %v394_v42  ;;  %v603_v44 = vpop.f32.mrb[1].mxu0 }
 0x236   : > { %v398_v45 = vmax.f32 %v395_v43, 0.0 }
 0x238   : > { %621 = vmatmul.mubr.msk.f32.vlgmr.msra.gmra.mrb[0].mxu1 %vm414_vm4, %v398_v45 }
 0x30b   : > { %v484_v47 = vpop.f32.mrb[0].mxu1 }
 0x30c   : > { %v485_v48 = vadd.f32 %v573_v46, %v484_v47  ;;  %v622_v49 = vpop.f32.mrb[1].mxu1 }
 0x30e   : > { %v488_v50 = vadd.f32 %v485_v48, %v848_v0 }
 0x310   : > { %489 = vst.msk [vmem:[%s269_s8] sm:$0xff] %vm275_vm0, %v488_v50 }
 0x311   : > { %700 = shalt.err (!%p697_p3)
}
 0x312   : > { %s701_s20 = scalar_lea.hbm %s909_s15, 128  ;;  %s705_s23 = scalar_lea.hbm %s959_s7, 256 }
 0x313   : > { %p702_p4 = scmp.ne.s32.totalorder %s909_s15, %s701_s20  ;;  %p706_p9 = scmp.lt.u32.totalorder %s909_s15, %s959_s7 }
 0x314   : > { %p707_p10 = scmp.lt.u32.totalorder %s705_s23, %s701_s20  ;;  %p709_p12 = scmp.lt.u32.totalorder %s701_s20, %s909_s15 }
 0x315   : > { %p703_p7 = pnand %p702_p4, %p833_p5 }
 0x316   : > { %p708_p11 = por %p707_p10, %p706_p9 }
 0x317   : > { %p704_p8 = pneg %p703_p7 }
 0x318   : > { %p710_p13 = por %p709_p12, %p708_p11 }
 0x31a   : > { %p711_p0 = pnand %p710_p13, %p704_p8 }
 0x31c   : > { %714 = shalt.err (!%p711_p0)
}
 0x31d   : > { %641 = dma.vmem_to_hbm [thread:$0]  (%p833_p5), %s911_s9, 128, %s909_s15, %s491_s16  }
 0x31e PF: > { %p647_p1 = scmp.ge.s32.totalorder %s749_s27, 2  ;;  %s516_s13 = sand.u32 1, %s737_s24  }
 0x31f   : > { %s517_s14 = scalar_lea.sflag [#allocation3], %s516_s13 }
 0x320   : > { %p644_p2 = pnand %p647_p1, %p837_p6 }
 0x322   : > { %732 = dma.done.wait (!%p644_p2), %s517_s14, 128  }
 0x323   : > { %734 = vsyncadd (!%p644_p2), %s517_s14, 4294967168  ;;  %p17_p3 = scmp.ge.s32.totalorder %s820_s30, 4   ;;  %s962_s24 = smov %s741_s25 }
 0x324   : > { %s963_s25 = smov %s745_s26  ;;  %s964_s26 = smov %s831_s10 }
 0x325   : > { %s965_s27 = smov %s820_s30  ;;  %19 = sbr.rel (!%p17_p3) target bundleno = 3 (0x3), region = 83 }
 0x32c   :  { %522 = vsyncpa [#allocation3], 1 }
 0x32d   :  { %524 = vsyncpa [#allocation3 + $0x1], 1 }

// kernel: encoder_layer_forward.4
= control target key start
LH: loop header
LB: loop body
LE: loop exit
PB: predicated region body
PF: predicated region fallthrough
CT: control target
= control target key end

     0   :  { %s1967_s0 = inlined_call_operand.vmem [shape: f32[2,8,32], index: 0, kind: input, shape index: {}]   ;;  %s1968_s1 = inlined_call_operand.vmem [shape: f32[2,8,32], index: 1, kind: input, shape index: {}]   ;;  %s1969_s2 = inlined_call_operand.vmem [shape: f32[2,8,32], index: 2, kind: input, shape index: {}]   ;;  %s1970_s3 = inlined_call_operand.vmem [shape: f32[2,8,32], index: 3, kind: input, shape index: {}]   ;;  %s1971_s4 = inlined_call_operand.vmem [shape: f32[2,8,8], index: 4, kind: input, shape index: {}]   ;;  %s1972_s5 = inlined_call_operand.vmem [shape: f32[2,8,8], index: 5, kind: input, shape index: {}]   ;;  %s1973_s6 = inlined_call_operand.vmem [shape: f32[2,8,8], index: 6, kind: input, shape index: {}]   ;;  %s1974_s7 = inlined_call_operand.vmem [shape: f32[32,32], index: 7, kind: input, shape index: {}]   ;;  %s1975_s8 = inlined_call_operand.vmem [shape: f32[1,32], index: 8, kind: input, shape index: {}]   ;;  %s1976_s9 = inlined_call_operand.vmem [shape: f32[2,8,32], index: 9, kind: output, shape index: {0}]   ;;  %s1977_s10 = inlined_call_operand.hbm [shape: f32[2,4,8,8], index: 10, kind: output, shape index: {1}]  }
   0x1   :  { %1981 = sst [smem:[#allocation5_spill]] %s1967_s0 }
   0x2   :  { %1982 = sst [smem:[#allocation6_spill]] %s1968_s1 }
   0x3   :  { %16 = vsyncpa [#allocation3], 0 }
   0x4   :  { %18 = vsyncpa [#allocation3 + $0x1], 0  ;;  %s1739_s13 = smov 0   ;;  %s1741_s14 = smov 0  }
   0x5   :  { %s1743_s15 = smov 0   ;;  %s1745_s16 = smov 0  }
   0x6 LB: > { %s1760_s17 = sadd.s32 4294967295, %s1671_s16   ;;  %s1430_s18 = sadd.s32 4294967294, %s1671_s16   ;;  %s1671_s16 = sphi %s1745_s16, %s1993_s16   ;;  %s1667_s15 = sphi %s1743_s15, %s1992_s15   ;;  %s1663_s14 = sphi %s1741_s14, %s1991_s14   ;;  %s1659_s13 = sphi %s1739_s13, %s1990_s13  }
   0x7   : > { %s1764_s19 = sadd.s32 1, %s1671_s16   ;;  %s281_s20 = sadd.s32 1, %s1667_s15 }
   0x8   : > { %s278_s21 = ssub.s32 %s1671_s16, %s1764_s19  ;;  %p291_p0 = scmp.ne.s32.totalorder %s1667_s15, %s1663_s14 }
   0x9   : > { %p279_p1 = scmp.eq.s32.totalorder %s278_s21, 0  ;;  %p292_p2 = scmp.eq.s32.totalorder %s1760_s17, 1 }
   0xa   : > { %p297_p3 = scmp.ne.s32.totalorder %s1663_s14, %s1659_s13  ;;  %p298_p4 = scmp.eq.s32.totalorder %s1430_s18, 1 }
   0xb   : > { %s1775_s22 = scalar_select %p279_p1, %s1667_s15, %s281_s20  }
   0xc   : > { %p1777_p5 = por %p292_p2, %p291_p0  ;;  %p1781_p6 = por %p298_p4, %p297_p3 }
   0xd   : > { %p1433_p7 = scmp.ge.s32.totalorder %s1671_s16, 1  ;;  %p371_p8 = scmp.lt.s32.totalorder %s1671_s16, 3 }
   0xf   : > { %p372_p9 = pnand %p1433_p7, %p371_p8 }
  0x10   : > { %p436_p10 = scmp.lt.s32.totalorder (!%p372_p9), %s1760_s17, 1  ;;  %v1673_v0 = vmov (!%p372_p9), 0.0   ;;  %vm1674_vm0 = vmmov (!%p372_p9), 0   ;;  %vm477_vm1 = vcmask (!%p372_p9), 64512   ;;  %s1985_s1 = sld [smem:[#allocation6_spill]] (!%p372_p9)  ;;  %vm1159_vm3 = vcmask (!%p372_p9), 130048  }
  0x11   : > { %375 = sbr.rel (%p372_p9) target bundleno = 1228 (0x4cc), region = 56  ;;  %1487 = vmatprep.subr.mxu0 (!%p372_p9), %v1673_v0  ;;  %1489 = vmatprep.mubr.msk.f32.mxu0 (!%p372_p9), %vm1674_vm0, %v1673_v0  ;;  %s1986_s0 = sld [smem:[#allocation5_spill]] (!%p372_p9)  ;;  %vm1161_vm4 = vcmask (!%p372_p9), 195584   ;;  %vm1174_vm5 = vcmask (!%p372_p9), 261120  }
  0x12   : > { %1497 = vmatprep.subr.mxu1 (!%p372_p9), %v1673_v0  ;;  %1499 = vmatprep.mubr.msk.f32.mxu1 (!%p372_p9), %vm1674_vm0, %v1673_v0  ;;  %s1980_s18 = smov (!%p372_p9), 120   ;;  %s1978_s20 = smov (!%p372_p9), 112  }
  0x13   : > { %s1979_s21 = smov (!%p372_p9), 104   ;;  %s1681_s27 = smov (!%p372_p9), 24  }
  0x18   : > { %s437_s25 = scalar_select %p436_p10, %s1760_s17, 1 }
  0x1a   : > { %s1795_s26 = sshll.u32 %s437_s25, 3 }
  0x1b   : > { %s443_s29 = scalar_lea.vmem %s1985_s1, %s1795_s26  ;;  %s439_s12 = scalar_lea.vmem %s1986_s0, %s1795_s26 }
  0x1c   : > { %v470_v1 = vld [vmem:[%s443_s29] sm:$0xff]  ;;  %s455_s28 = scalar_lea.vmem %s1971_s4, %s1795_s26  ;;  %s459_s11 = scalar_lea.vmem %s1972_s5, %s1795_s26 }
  0x1d   : > { %v468_v2 = vld [vmem:[%s439_s12] sm:$0xff]  ;;  %643 = vrot.lane.b32.xlu0 %v470_v1, %s1980_s18  ;;  %1488 = vmatpush3.xpose.msk.msra.mxu0 %vm477_vm1, %v470_v1  ;;  %s447_s1 = scalar_lea.vmem %s1969_s2, %s1795_s26  ;;  %s1987_s0 = smov 120  }
  0x1e   : > { %v469_v3 = vmul.f32 0.35355338, %v468_v2  ;;  %812 = vrot.lane.b32.xlu1 %v470_v1, %s1978_s20  ;;  %1492 = vmatprep.subr.mxu0 %v1673_v0  ;;  %v472_v10 = vld [vmem:[%s455_s28] sm:$0xff]  ;;  %s1465_s28 = sshll.u32 %s1760_s17, 9  ;;  %s1682_s17 = smov [#allocation2]  }
  0x1f   : > { %v473_v11 = vld [vmem:[%s459_s11] sm:$0xff]  ;;  %s1907_s12 = scalar_lea.hbm %s1977_s10, %s1465_s28 }
  0x20   : > { %1490 = vmatmul.mubr.msk.f32.vlgmr.msra.gmra.mrb[0].mxu0 %vm477_vm1, %v469_v3  ;;  %v474_v12 = vmul.f32 %v473_v11, %v472_v10  ;;  %v471_v16 = vld [vmem:[%s447_s1] sm:$0xff]  ;;  %s1988_s1 = smov 104   ;;  %v1166_v10 = vld [vmem:[%s1974_s7 + $0x18] sm:$0xff] }
  0x21   : > { %641 = vrot.lane.b32.xlu0 %v469_v3, %s1980_s18  ;;  %1494 = vmatprep.mubr.msk.f32.mxu0 %vm1674_vm0, %v1673_v0  ;;  %s1989_s18 = smov 112  }
  0x22   : > { %810 = vrot.lane.b32.xlu1 %v469_v3, %s1978_s20  ;;  %1493 = vmatpush3.msra.mxu0 %v471_v16  ;;  %s433_s20 = sand.u32 1, %s1663_s14  }
  0x23   : > { %1502 = vmatprep.subr.mxu0 %v1673_v0 }
  0x25   : > { %980 = vrot.lane.b32.xlu0 %v470_v1, %s1979_s21 }
  0x26   : > { %978 = vrot.lane.b32.xlu1 %v469_v3, %s1979_s21  ;;  %s463_s21 = scalar_lea.vmem %s1973_s6, %s1795_s26 }
  0x27   : > { %v475_v13 = vld [vmem:[%s463_s21] sm:$0xff]  ;;  %s1434_s21 = sshll.u32 %s433_s20, 5 }
  0x28   : > { %v476_v14 = vmul.f32 %v475_v13, %v474_v12  ;;  %s1865_s25 = scalar_lea.vmem [#allocation2], %s1434_s21  ;;  %s1680_s21 = smov 16  }
  0x29   : > { %s1272_s29 = sshll.u32 %s1865_s25, 4  ;;  %s1909_s29 = int_to_ptr.vmem [resolvable:$true] %s1272_s29 }
  0x2a   : > { %vm554_vm2 = vcmp.eq.f32.partialorder %v476_v14, 0.0 }
  0x8f   : > { %v644_v4 = vpop.permute.xlu0 %643 }
  0x90   : > { %1498 = vmatpush3.xpose.msk.msra.mxu1 %vm477_vm1, %v644_v4  ;;  %v813_v5 = vpop.permute.xlu1 %812 }
  0x91   : > { %1507 = vmatprep.subr.mxu1 %v1673_v0 }
  0x93   : > { %v642_v6 = vpop.permute.xlu0 %641 }
  0x94   : > { %1500 = vmatmul.mubr.msk.f32.vlgmr.msra.gmra.mrb[0].mxu1 %vm477_vm1, %v642_v6  ;;  %v811_v7 = vpop.permute.xlu1 %810  ;;  %v1163_v6 = vld [vmem:[%s1974_s7] sm:$0xff] }
  0x95   : > { %1508 = vmatpush3.xpose.msk.msra.mxu1 %vm477_vm1, %v813_v5  ;;  %1509 = vmatprep.mubr.msk.f32.mxu1 %vm1674_vm0, %v1673_v0 }
  0x96   : > { %1517 = vmatprep.subr.mxu1 %v1673_v0 }
  0x97   : > { %v981_v8 = vpop.permute.xlu0 %980 }
  0x98   : > { %1510 = vmatmul.mubr.msk.f32.vlgmr.msra.gmra.mrb[2].mxu1 %vm477_vm1, %v811_v7  ;;  %v979_v9 = vpop.permute.xlu1 %978  ;;  %v1164_v7 = vld [vmem:[%s1974_s7 + $0x8] sm:$0xff] }
  0x99   : > { %1518 = vmatpush3.xpose.msk.msra.mxu1 %vm477_vm1, %v981_v8  ;;  %1519 = vmatprep.mubr.msk.f32.mxu1 %vm1674_vm0, %v1673_v0  ;;  %v1678_v8 = vmov 0.0|0.0  }
  0x9a   : > { %1538 = vmatprep.subr.bf16.mxu1 %v1678_v8 }
  0x9c   : > { %1520 = vmatmul.mubr.msk.f32.vlgmr.msra.gmra.mrb[4].mxu1 %vm477_vm1, %v979_v9  ;;  %v1539_v9 = vpack.c.bf16 %v1164_v7, %v1163_v6 }
  0x9d   : > { %1535 = vmatprep.mubr.msk.f32.mxu1 %vm1674_vm0, %v1673_v0 }
  0x9e   : > { %1540 = vmatpush3.bf16.msra.mxu1 %v1539_v9 }
  0x9f   : > { %1541 = vmatprep.subr.bf16.mxu1 %v1678_v8 }
  0xf3   : > { %v550_v15 = vpop.f32.mrb[0].mxu0 }
  0xf4   : > { %v555_v17 = vsel %vm554_vm2, -1e+09, %v550_v15  ;;  %v1491_v18 = vpop.f32.mrb[1].mxu0 }
  0xf5   : > { %v556_v19 = vsel %vm477_vm1, %v555_v17, -inf }
  0xf6   : > { %557 = vmax.xlane.f32.xlu0 %v556_v19 }
 0x167   : > { %v715_v20 = vpop.f32.mrb[0].mxu1 }
 0x168   : > { %v719_v21 = vsel %vm554_vm2, -1e+09, %v715_v20  ;;  %v1501_v22 = vpop.f32.mrb[1].mxu1 }
 0x169   : > { %v720_v23 = vsel %vm477_vm1, %v719_v21, -inf }
 0x16a   : > { %721 = vmax.xlane.f32.xlu1 %v720_v23 }
 0x16b   : > { %v884_v24 = vpop.f32.mrb[2].mxu1 }
 0x16c   : > { %v888_v25 = vsel %vm554_vm2, -1e+09, %v884_v24  ;;  %v1511_v26 = vpop.f32.mrb[3].mxu1 }
 0x16d   : > { %v889_v27 = vsel %vm477_vm1, %v888_v25, -inf }
 0x16e   : > { %890 = vmax.xlane.f32.xlu0 %v889_v27 }
 0x16f   : > { %v1052_v28 = vpop.f32.mrb[4].mxu1 }
 0x170   : > { %v1056_v29 = vsel %vm554_vm2, -1e+09, %v1052_v28  ;;  %v1521_v30 = vpop.f32.mrb[5].mxu1 }
 0x171   : > { %v1057_v31 = vsel %vm477_vm1, %v1056_v29, -inf }
 0x172   : > { %1058 = vmax.xlane.f32.xlu0 %v1057_v31 }
 0x17b   : > { %734 = vrot.lane.b32.xlu1 %v471_v16, %s1987_s0  ;;  %s1913_s0 = scalar_lea.sflag [#allocation3], %s433_s20 }
 0x183   : > { %v558_v32 = vpop.xlane.xlu0 %557 }
 0x184   : > { %v559_v33 = vsub.f32 %v555_v17, %v558_v32 }
 0x186   : > { %v560_v34 = vmul.f32 1.442695, %v559_v33 }
 0x188   : > { %1593 = vpow2.f32 %v560_v34 }
 0x192   : > { %v1594_v35 = vpop.eup %1593 }
 0x193   : > { %v562_v36 = vsel %vm477_vm1, %v1594_v35, 0.0 }
 0x19f   : > { %563 = vadd.xlane.f32.xlu1 %v562_v36 }
 0x1f7   : > { %v722_v37 = vpop.xlane.xlu1 %721 }
 0x1f8   : > { %v723_v38 = vsub.f32 %v719_v21, %v722_v37 }
 0x1fa   : > { %v724_v39 = vmul.f32 1.442695, %v723_v38 }
 0x1fb   : > { %v891_v40 = vpop.xlane.xlu0 %890  ;;  %v735_v52 = vpop.permute.xlu1 %734 }
 0x1fc   : > { %1595 = vpow2.f32 %v724_v39  ;;  %v892_v41 = vsub.f32 %v888_v25, %v891_v40 }
 0x1fe   : > { %v893_v42 = vmul.f32 1.442695, %v892_v41 }
 0x1ff   : > { %v1059_v43 = vpop.xlane.xlu0 %1058 }
 0x200   : > { %1597 = vpow2.f32 %v893_v42  ;;  %v1060_v44 = vsub.f32 %v1056_v29, %v1059_v43 }
 0x202   : > { %v1061_v45 = vmul.f32 1.442695, %v1060_v44 }
 0x204   : > { %1599 = vpow2.f32 %v1061_v45 }
 0x206   : > { %v1596_v46 = vpop.eup %1595 }
 0x207   : > { %v726_v47 = vsel %vm477_vm1, %v1596_v46, 0.0 }
 0x208   : > { %727 = vadd.xlane.f32.xlu0 %v726_v47 }
 0x20a   : > { %v1598_v48 = vpop.eup %1597 }
 0x20b   : > { %v895_v49 = vsel %vm477_vm1, %v1598_v48, 0.0 }
 0x20c   : > { %896 = vadd.xlane.f32.xlu1 %v895_v49 }
 0x20e   : > { %v1600_v50 = vpop.eup %1599 }
 0x20f   : > { %v1063_v51 = vsel %vm477_vm1, %v1600_v50, 0.0 }
 0x210   : > { %1064 = vadd.xlane.f32.xlu0 %v1063_v51 }
 0x21d   : > { %1070 = vrot.lane.b32.xlu1 %v471_v16, %s1988_s1  ;;  %s1609_s1 = scalar_lea.vmem %s1909_s29, 512 }
 0x21e   : > { %p1610_p11 = scmp.ne.s32.totalorder %s1909_s29, %s1609_s1 }
 0x220   : > { %p1611_p12 = pnand %p1610_p11, %p1777_p5 }
 0x222   : > { %p1612_p13 = pneg %p1611_p12 }
 0x226   : > { %902 = vrot.lane.b32.xlu0 %v471_v16, %s1989_s18  ;;  %s1679_s18 = smov 8  }
 0x22c   : > { %v564_v53 = vpop.xlane.xlu1 %563 }
 0x22d   : > { %1601 = vrcp.f32 %v564_v53 }
 0x237   : > { %v1602_v54 = vpop.eup %1601 }
 0x238   : > { %v566_v55 = vmul.f32 %v1602_v54, %v1594_v35 }
 0x23a   : > { %567 = vst.msk [vmem:[%s1865_s25] sm:$0xff] %vm477_vm1, %v566_v55  ;;  %1495 = vmatmul.mubr.msk.f32.vlgmr.msra.gmra.mrb[2].mxu0 %vm477_vm1, %v566_v55 }
 0x23b   : > { %1503 = vmatpush3.msra.mxu0 %v735_v52  ;;  %1504 = vmatprep.mubr.msk.f32.mxu0 %vm1674_vm0, %v1673_v0 }
 0x23c   : > { %1512 = vmatprep.subr.mxu0 %v1673_v0 }
 0x295   : > { %v728_v56 = vpop.xlane.xlu0 %727 }
 0x296   : > { %1603 = vrcp.f32 %v728_v56 }
 0x299   : > { %v897_v57 = vpop.xlane.xlu1 %896 }
 0x29a   : > { %1605 = vrcp.f32 %v897_v57 }
 0x29d   : > { %v1065_v58 = vpop.xlane.xlu0 %1064  ;;  %v1071_v1 = vpop.permute.xlu1 %1070 }
 0x29e   : > { %1607 = vrcp.f32 %v1065_v58 }
 0x2a0   : > { %v1604_v59 = vpop.eup %1603 }
 0x2a1   : > { %v730_v60 = vmul.f32 %v1604_v59, %v1596_v46  ;;  %v903_v61 = vpop.permute.xlu0 %902 }
 0x2a3   : > { %1448 = vst.msk [vmem:[%s1865_s25 + $0x8] sm:$0xff] %vm477_vm1, %v730_v60  ;;  %1505 = vmatmul.mubr.msk.f32.vlgmr.msra.gmra.mrb[4].mxu0 %vm477_vm1, %v730_v60 }
 0x2a4   : > { %v1606_v62 = vpop.eup %1605  ;;  %1513 = vmatpush3.msra.mxu0 %v903_v61  ;;  %1514 = vmatprep.mubr.msk.f32.mxu0 %vm1674_vm0, %v1673_v0 }
 0x2a5   : > { %v899_v63 = vmul.f32 %v1606_v62, %v1598_v48  ;;  %1522 = vmatprep.subr.mxu0 %v1673_v0 }
 0x2a7   : > { %1452 = vst.msk [vmem:[%s1865_s25 + $0x10] sm:$0xff] %vm477_vm1, %v899_v63  ;;  %1515 = vmatmul.mubr.msk.f32.vlgmr.msra.gmra.mrb[6].mxu0 %vm477_vm1, %v899_v63 }
 0x2a8   : > { %v1608_v2 = vpop.eup %1607  ;;  %1523 = vmatpush3.msra.mxu0 %v1071_v1  ;;  %1524 = vmatprep.mubr.msk.f32.mxu0 %vm1674_vm0, %v1673_v0  ;;  %v1165_v0 = vld [vmem:[%s1974_s7 + $0x10] sm:$0xff] }
 0x2a9   : > { %v1067_v3 = vmul.f32 %v1608_v2, %v1600_v50  ;;  %v1542_v11 = vpack.c.bf16 %v1166_v10, %v1165_v0 }
 0x2ab   : > { %1456 = vst.msk [vmem:[%s1865_s25 + $0x18] sm:$0xff] %vm477_vm1, %v1067_v3  ;;  %1525 = vmatmul.mubr.msk.f32.vlgmr.msra.gmra.mrb[8].mxu0 %vm477_vm1, %v1067_v3  ;;  %1543 = vmatpush3.bf16.msra.mxu1 %v1542_v11  ;;  %s1613_s25 = sshll.u32 %s1682_s17, 4  ;;  %s1614_s25 = int_to_ptr.vmem [resolvable:$false] %s1613_s25 }
 0x2ac   : > { %p1616_p0 = scmp.lt.s32.totalorder %s1909_s29, %s1614_s25 }
 0x30d   : > { %v637_v4 = vpop.f32.mrb[2].mxu0 }
 0x30e   : > { %v1496_v5 = vpop.f32.mrb[3].mxu0 }
 0x376   : > { %v806_v12 = vpop.f32.mrb[4].mxu0 }
 0x377   : > { %1147 = vrot.lane.b32.xlu1 %v806_v12, %s1679_s18  ;;  %v1506_v13 = vpop.f32.mrb[5].mxu0 }
 0x37a   : > { %v974_v14 = vpop.f32.mrb[6].mxu0 }
 0x37b   : > { %1151 = vrot.lane.b32.xlu0 %v974_v14, %s1680_s21  ;;  %v1516_v15 = vpop.f32.mrb[7].mxu0  ;;  %s1615_s21 = scalar_lea.vmem %s1614_s25, 1024 }
 0x37c   : > { %p1617_p1 = scmp.lt.s32.totalorder %s1615_s21, %s1609_s1 }
 0x37e   : > { %v1142_v16 = vpop.f32.mrb[8].mxu0  ;;  %p1618_p2 = por %p1617_p1, %p1616_p0 }
 0x37f   : > { %1155 = vrot.lane.b32.xlu1 %v1142_v16, %s1681_s27  ;;  %v1526_v17 = vpop.f32.mrb[9].mxu0 }
 0x380   : > { %p1619_p3 = pnand %p1618_p2, %p1612_p13 }
 0x3e9   : > { %v1148_v18 = vpop.permute.xlu1 %1147 }
 0x3ea   : > { %v1158_v20 = vsel %vm477_vm1, %v637_v4, %v1148_v18 }
 0x3ed   : > { %v1152_v19 = vpop.permute.xlu0 %1151 }
 0x3ee   : > { %v1160_v21 = vsel %vm1159_vm3, %v1158_v20, %v1152_v19 }
 0x3f1   : > { %v1156_v22 = vpop.permute.xlu1 %1155 }
 0x3f2   : > { %v1162_v23 = vsel %vm1161_vm4, %v1160_v21, %v1156_v22 }
 0x3f3   : > { %1536 = vmatmul.mubr.msk.f32.vlgmr.msra.gmra.mrb[6].mxu1 %vm1174_vm5, %v1162_v23 }
 0x3f4   : > { %1622 = shalt.err (!%p1619_p3)
}
 0x3f5   : > { %s1623_s20 = scalar_lea.hbm %s1907_s12, 512  ;;  %s1627_s30 = scalar_lea.hbm %s1977_s10, 1024 }
 0x3f6   : > { %p1624_p4 = scmp.ne.s32.totalorder %s1907_s12, %s1623_s20  ;;  %p1628_p9 = scmp.lt.u32.totalorder %s1907_s12, %s1977_s10 }
 0x3f7   : > { %p1629_p10 = scmp.lt.u32.totalorder %s1627_s30, %s1623_s20  ;;  %p1631_p12 = scmp.lt.u32.totalorder %s1623_s20, %s1907_s12 }
 0x3f8   : > { %p1625_p7 = pnand %p1624_p4, %p1777_p5 }
 0x3f9   : > { %p1630_p11 = por %p1629_p10, %p1628_p9 }
 0x3fa   : > { %p1626_p8 = pneg %p1625_p7 }
 0x3fb   : > { %p1632_p13 = por %p1631_p12, %p1630_p11 }
 0x3fd   : > { %p1633_p0 = pnand %p1632_p13, %p1626_p8 }
 0x3ff   : > { %1636 = shalt.err (!%p1633_p0)
}
 0x400   : > { %s1683_s1 = smov 128   ;;  %s451_s27 = scalar_lea.vmem %s1970_s3, %s1795_s26  ;;  %v1458_v24 = vld [vmem:[%s1975_s8] ss:$0 sm:$0xff] }
 0x401   : > { %1544 = dma.vmem_to_hbm [thread:$0]  (%p1777_p5), %s1909_s29, 512, %s1907_s12, %s1913_s0, %s1683_s1, %s1683_s1, %s1679_s18  }
 0x402   : > { %v1248_v26 = vld [vmem:[%s451_s27] sm:$0xff]  ;;  %s467_s11 = scalar_lea.vmem %s1976_s9, %s1795_s26 }
 0x4c6   : > { %v1244_v25 = vpop.f32.mrb[6].mxu1 }
 0x4c7   : > { %v1245_v27 = vadd.f32 %v1458_v24, %v1244_v25  ;;  %v1537_v28 = vpop.f32.mrb[7].mxu1 }
 0x4c9   : > { %v1249_v29 = vadd.f32 %v1248_v26, %v1245_v27 }
 0x4cb   : > { %1250 = vst.msk [vmem:[%s467_s11] sm:$0xff] %vm1174_vm5, %v1249_v29 }
 0x4cc PF: > { %p1550_p5 = scmp.ge.s32.totalorder %s1671_s16, 2  ;;  %s1294_s18 = sand.u32 1, %s1659_s13  }
 0x4cd   : > { %s1295_s29 = scalar_lea.sflag [#allocation3], %s1294_s18 }
 0x4ce   : > { %p1547_p1 = pnand %p1550_p5, %p1781_p6 }
 0x4d0   : > { %1654 = dma.done.wait (!%p1547_p1), %s1295_s29, 512  }
 0x4d1   : > { %1656 = vsyncadd (!%p1547_p1), %s1295_s29, 4294966784  ;;  %p21_p2 = scmp.ge.s32.totalorder %s1764_s19, 4   ;;  %s1990_s13 = smov %s1663_s14 }
 0x4d2   : > { %s1991_s14 = smov %s1667_s15  ;;  %s1992_s15 = smov %s1775_s22 }
 0x4d3   : > { %s1993_s16 = smov %s1764_s19  ;;  %23 = sbr.rel (!%p21_p2) target bundleno = 6 (0x6), region = 124 }
 0x4da   :  { %1300 = vsyncpa [#allocation3], 1 }
 0x4db   :  { %1302 = vsyncpa [#allocation3 + $0x1], 1 }

</bundles_post_ra>
